<compile_context>
chip_gen: v6e
topology: v6e:2x2x1
jax: 0.10.0
libtpu: 0.0.40
codegen_flags: <defaults>
</compile_context>

<pallas_src>
import functools

import jax
import jax.numpy as jnp
from jax.experimental import pallas as pl
from jax.experimental.pallas import tpu as pltpu

LANE = 128


def _round_up(x, m):
    return (x + m - 1) // m * m


def _pad2(a, rows, cols):
    return jnp.pad(a, ((0, rows - a.shape[0]), (0, cols - a.shape[1])))


def _vmem_limit_bytes():
    # Generation-aware scoped-VMEM cap: ~3/4 of physical, never above 100 MiB.
    # v5e/v6e have 128 MiB physical (-> 96 MiB), v7x only 64 MiB (-> 48 MiB).
    try:
        phys = pltpu.get_tpu_info().vmem_capacity_bytes
        return min(int(phys) * 3 // 4, 100 * 1024 * 1024)
    except Exception:
        return 48 * 1024 * 1024  # safe on every generation, incl. v7x


def _choose_row_tile(n, c_max, vmem_limit):
    """Row tile for the full-K aggregation plan, or None if it cannot fit."""
    budget = int(vmem_limit * 0.7)

    def ws_bytes(tm, n_pad):
        return (2 * tm * n_pad * 2        # double-buffered bf16 A_hat row slab
                + 2 * n_pad * c_max * 2   # resident XW (conservatively x2)
                + 4 * tm * c_max * 4)     # output block + f32 temporaries

    # Biggest tile that still leaves >= 2 row tiles (keeps both v7x TCs busy).
    for tm in (1024, 512, 256, 128):
        n_pad = _round_up(n, tm)
        if n_pad // tm >= 2 and ws_bytes(tm, n_pad) <= budget:
            return tm
    # Tiny graph: a single row tile covering all nodes.
    tm = _round_up(n, LANE)
    if tm <= 1024 and ws_bytes(tm, tm) <= budget:
        return tm
    return None  # too big for the full-K plan -> K-tiled fallback


def plan_tiles(n, in_c, hid_c, out_c):
    """Static tiling plan: (tm, tk, n_pad, vmem_limit). tk is None => full-K."""
    c_max = max(_round_up(c, LANE) for c in (in_c, hid_c, out_c))
    vmem_limit = _vmem_limit_bytes()
    tm = _choose_row_tile(n, c_max, vmem_limit)
    if tm is not None:
        return tm, None, _round_up(n, tm), vmem_limit
    # Fallback for very large graphs: big tiles, K-tiled accumulation.
    # tm=512 keeps the XW re-fetch ratio c_p/tm <= 0.25; tk=2048 keeps A DMAs long.
    tm, tk = 512, 2048
    return tm, tk, _round_up(n, max(tm, tk)), vmem_limit


def prepare_adjacency(a_hat, n_pad):
    """Pad + bf16-cast A_hat ONCE (hoisted out of the per-forward jit)."""
    return _pad2(a_hat, n_pad, n_pad).astype(jnp.bfloat16)


# --------------------------------------------------------------------------
# Kernel 1: feature transform  XW = X @ W   (bf16 in/out, f32 MXU accumulate)
# --------------------------------------------------------------------------
def _transform_kernel(x_ref, w_ref, o_ref):
    o_ref[...] = jnp.dot(
        x_ref[...], w_ref[...], preferred_element_type=jnp.float32
    ).astype(o_ref.dtype)


def feature_transform(x_p, w_p, tm, vmem_limit):
    n_pad, in_p = x_p.shape
    out_p = w_p.shape[1]
    return pl.pallas_call(
        _transform_kernel,
        out_shape=jax.ShapeDtypeStruct((n_pad, out_p), jnp.bfloat16),
        grid_spec=pltpu.PrefetchScalarGridSpec(
            num_scalar_prefetch=0,
            grid=(n_pad // tm,),
            in_specs=[
                pl.BlockSpec((tm, in_p), lambda i: (i, 0)),
                pl.BlockSpec((in_p, out_p), lambda i: (0, 0)),   # resident W
            ],
            out_specs=pl.BlockSpec((tm, out_p), lambda i: (i, 0)),
        ),
        compiler_params=pltpu.CompilerParams(
            dimension_semantics=("parallel",),
            vmem_limit_bytes=vmem_limit,
        ),
    )(x_p, w_p)


# --------------------------------------------------------------------------
# Kernel 2: aggregation  out_rowtile = A_hat_rowtile @ XW (+ bias)
#   full-K plan (preferred): one dot per row tile, XW resident in VMEM
#   variant A (mid layer):  relu(acc + b) @ W_next   -> bf16
#   variant B (last layer): acc + b                  -> f32
# --------------------------------------------------------------------------
def _agg_relu_transform_kernel(a_ref, xw_ref, b_ref, wn_ref, o_ref):
    acc = jnp.dot(a_ref[...], xw_ref[...], preferred_element_type=jnp.float32)
    h = jnp.maximum(acc + b_ref[...], 0.0)
    o_ref[...] = jnp.dot(
        h.astype(jnp.bfloat16), wn_ref[...], preferred_element_type=jnp.float32
    ).astype(o_ref.dtype)


def _agg_bias_kernel(a_ref, xw_ref, b_ref, o_ref):
    o_ref[...] = (
        jnp.dot(a_ref[...], xw_ref[...], preferred_element_type=jnp.float32)
        + b_ref[...]
    ).astype(o_ref.dtype)


# K-tiled fallback (only used when the full-K row slab cannot fit VMEM).
def _agg_relu_transform_ktiled_kernel(a_ref, xw_ref, b_ref, wn_ref, o_ref, acc_ref):
    k = pl.program_id(1)

    @pl.when(k == 0)
    def _():
        acc_ref[...] = jnp.zeros_like(acc_ref)

    acc_ref[...] += jnp.dot(
        a_ref[...], xw_ref[...], preferred_element_type=jnp.float32
    )

    @pl.when(k == pl.num_programs(1) - 1)
    def _():
        h = jnp.maximum(acc_ref[...] + b_ref[...], 0.0)
        o_ref[...] = jnp.dot(
            h.astype(jnp.bfloat16), wn_ref[...], preferred_element_type=jnp.float32
        ).astype(o_ref.dtype)


def _agg_bias_ktiled_kernel(a_ref, xw_ref, b_ref, o_ref):
    # Accumulate directly into the revisited f32 output block (no scratch).
    k = pl.program_id(1)

    @pl.when(k == 0)
    def _():
        o_ref[...] = jnp.zeros_like(o_ref)

    o_ref[...] += jnp.dot(
        a_ref[...], xw_ref[...], preferred_element_type=jnp.float32
    )

    @pl.when(k == pl.num_programs(1) - 1)
    def _():
        o_ref[...] += b_ref[...]


def aggregate(a_p, xw_p, b_p, tm, w_next_p=None, *, tk=None, vmem_limit=48 * 1024 * 1024):
    n_pad = a_p.shape[0]
    c_p = xw_p.shape[1]

    if tk is None:
        # ---- full-K plan: 1-D grid, contiguous A row slabs, resident XW ----
        in_specs = [
            pl.BlockSpec((tm, n_pad), lambda i: (i, 0)),     # A_hat row slab
            pl.BlockSpec((n_pad, c_p), lambda i: (0, 0)),    # XW, fetched once
            pl.BlockSpec((1, c_p), lambda i: (0, 0)),        # bias
        ]
        args = [a_p, xw_p, b_p]
        if w_next_p is not None:
            in_specs.append(pl.BlockSpec(w_next_p.shape, lambda i: (0, 0)))
            args.append(w_next_p)
            kernel, out_p, out_dtype = (
                _agg_relu_transform_kernel, w_next_p.shape[1], jnp.bfloat16)
        else:
            kernel, out_p, out_dtype = _agg_bias_kernel, c_p, jnp.float32
        grid = (n_pad // tm,)
        out_spec = pl.BlockSpec((tm, out_p), lambda i: (i, 0))
        scratch = []
        dims = ("parallel",)
    else:
        # ---- K-tiled fallback for very large graphs ----
        in_specs = [
            pl.BlockSpec((tm, tk), lambda i, k: (i, k)),
            pl.BlockSpec((tk, c_p), lambda i, k: (k, 0)),
            pl.BlockSpec((1, c_p), lambda i, k: (0, 0)),
        ]
        args = [a_p, xw_p, b_p]
        if w_next_p is not None:
            in_specs.append(pl.BlockSpec(w_next_p.shape, lambda i, k: (0, 0)))
            args.append(w_next_p)
            kernel, out_p, out_dtype = (
                _agg_relu_transform_ktiled_kernel, w_next_p.shape[1], jnp.bfloat16)
            scratch = [pltpu.VMEM((tm, c_p), jnp.float32)]
        else:
            kernel, out_p, out_dtype = _agg_bias_ktiled_kernel, c_p, jnp.float32
            scratch = []
        grid = (n_pad // tm, n_pad // tk)
        out_spec = pl.BlockSpec((tm, out_p), lambda i, k: (i, 0))
        dims = ("parallel", "arbitrary")

    return pl.pallas_call(
        kernel,
        out_shape=jax.ShapeDtypeStruct((n_pad, out_p), out_dtype),
        grid_spec=pltpu.PrefetchScalarGridSpec(
            num_scalar_prefetch=0,
            grid=grid,
            in_specs=in_specs,
            out_specs=out_spec,
            scratch_shapes=scratch,
        ),
        compiler_params=pltpu.CompilerParams(
            dimension_semantics=dims,
            vmem_limit_bytes=vmem_limit,
        ),
    )(*args)


# --------------------------------------------------------------------------
# Full GCNEncoder forward (takes pre-padded A so A-prep stays out of the jit)
# --------------------------------------------------------------------------
@functools.partial(jax.jit, static_argnames=("tm", "tk", "vmem_limit"))
def gcn_encoder_forward(a_p, x, w1, b1, w2, b2, *, tm, tk=None,
                        vmem_limit=48 * 1024 * 1024):
    n_pad = a_p.shape[0]
    in_p = _round_up(x.shape[1], LANE)
    hid_p = _round_up(w1.shape[1], LANE)
    out_p = _round_up(w2.shape[1], LANE)

    # Small per-call pads (X, weights, biases); A is already padded/cast.
    x_p = _pad2(x, n_pad, in_p).astype(jnp.bfloat16)
    w1_p = _pad2(w1, in_p, hid_p).astype(jnp.bfloat16)
    w2_p = _pad2(w2, hid_p, out_p).astype(jnp.bfloat16)
    b1_p = jnp.pad(b1, (0, hid_p - b1.shape[0])).reshape(1, hid_p).astype(jnp.float32)
    b2_p = jnp.pad(b2, (0, out_p - b2.shape[0])).reshape(1, out_p).astype(jnp.float32)

    # Layer 1 feature transform.
    xw1 = feature_transform(x_p, w1_p, tm, vmem_limit)
    # Layer 1 aggregation + bias + relu, fused with layer 2's feature transform.
    xw2 = aggregate(a_p, xw1, b1_p, tm, w_next_p=w2_p, tk=tk, vmem_limit=vmem_limit)
    # Layer 2 aggregation + bias.
    return aggregate(a_p, xw2, b2_p, tm, tk=tk, vmem_limit=vmem_limit)


def gcn_encoder_pallas(a_hat, x, w1, b1, w2, b2):
    """One-shot convenience wrapper (plan tiles, prep A once, run forward)."""
    n, in_c = x.shape
    hid_c, out_c = w1.shape[1], w2.shape[1]
    tm, tk, n_pad, vmem_limit = plan_tiles(n, in_c, hid_c, out_c)
    a_p = prepare_adjacency(a_hat, n_pad)  # reuse a_p across forwards when A is fixed
    out = gcn_encoder_forward(a_p, x, w1, b1, w2, b2,
                              tm=tm, tk=tk, vmem_limit=vmem_limit)
    return out[:n, :out_c]


# --------------------------------------------------------------------------
# Graph / parameter glue (plain JAX)
# --------------------------------------------------------------------------
def build_normalized_adjacency(edge_index, num_nodes):
    """Dense \\hat{A} = D^{-1/2} (A + I) D^{-1/2} from a [2, E] edge_index."""
    src, dst = edge_index[0], edge_index[1]
    a = jnp.zeros((num_nodes, num_nodes), jnp.float32)
    # message flows src -> dst: A[dst, src] = 1
    a = a.at[dst, src].set(1.0)
    # add_remaining_self_loops semantics: existing self-loops stay at weight 1
    a = jnp.maximum(a, jnp.eye(num_nodes, dtype=jnp.float32))
    deg = jnp.sum(a, axis=1)
    d_inv_sqrt = jnp.where(deg > 0, 1.0 / jnp.sqrt(deg), 0.0)
    return d_inv_sqrt[:, None] * a * d_inv_sqrt[None, :]


def glorot(key, shape):
    fan_in, fan_out = shape
    limit = jnp.sqrt(6.0 / (fan_in + fan_out))
    return jax.random.uniform(key, shape, jnp.float32, -limit, limit)


if __name__ == "__main__":
    # Small but non-trivial problem: 300 nodes -> tm=256, n_pad=512, 2 row tiles.
    N, IN_C, HID_C, OUT_C = 300, 16, 32, 8

    key = jax.random.PRNGKey(0)
    k_x, k_w1, k_w2, k_b1, k_b2 = jax.random.split(key, 5)

    x = jax.random.normal(k_x, (N, IN_C), jnp.float32)

    # Deterministic ring graph (bidirectional edges).
    src = jnp.arange(N, dtype=jnp.int32)
    dst = (src + 1) % N
    edge_index = jnp.stack(
        [jnp.concatenate([src, dst]), jnp.concatenate([dst, src])], axis=0
    )

    # Parameters (GCNConv: weight [in, out] glorot; biases random to exercise
    # the bias path — PyG init is zeros, forward math is identical).
    w1 = glorot(k_w1, (IN_C, HID_C))
    b1 = 0.1 * jax.random.normal(k_b1, (HID_C,), jnp.float32)
    w2 = glorot(k_w2, (HID_C, OUT_C))
    b2 = 0.1 * jax.random.normal(k_b2, (OUT_C,), jnp.float32)

    a_hat = build_normalized_adjacency(edge_index, N)

    # Hoisted A prep: plan once, pad/cast A once, reuse across forwards.
    tm, tk, n_pad, vmem_limit = plan_tiles(N, IN_C, HID_C, OUT_C)
    a_p = jax.block_until_ready(prepare_adjacency(a_hat, n_pad))

    out_pad = gcn_encoder_forward(a_p, x, w1, b1, w2, b2,
                                  tm=tm, tk=tk, vmem_limit=vmem_limit)
    out = jax.block_until_ready(out_pad[:N, :OUT_C])

    # Plain-JAX reference with the same bf16 operand / intermediate rounding.
    bf = lambda t: t.astype(jnp.bfloat16).astype(jnp.float32)
    a_f, x_f, w1_f, w2_f = bf(a_hat), bf(x), bf(w1), bf(w2)
    xw1_r = bf(x_f @ w1_f)
    h1_r = jnp.maximum(a_f @ xw1_r + b1[None, :], 0.0)
    xw2_r = bf(bf(h1_r) @ w2_f)
    ref = a_f @ xw2_r + b2[None, :]

    assert out.shape == (N, OUT_C)
    assert jnp.allclose(out, ref, atol=2e-2, rtol=2e-2), (
        float(jnp.max(jnp.abs(out - ref)))
    )

    print("KERNEL_OK")
</pallas_src>

<mosaic_0001>
module attributes {stable_mosaic.version = 11 : i64} {
  func.func @_agg_relu_transform_kernel(%arg0: i32, %arg1: memref<256x512xbf16, #tpu.memory_space<vmem>>, %arg2: memref<512x128xbf16, #tpu.memory_space<vmem>>, %arg3: memref<1x128xf32, #tpu.memory_space<vmem>>, %arg4: memref<128x128xbf16, #tpu.memory_space<vmem>>, %arg5: memref<256x128xbf16, #tpu.memory_space<vmem>>) attributes {dimension_semantics = [#tpu.dimension_semantics<parallel>], iteration_bounds = array<i64: 2>, scalar_prefetch = 0 : i64, scratch_operands = 0 : i64, tpu.core_type = #tpu.core_type<tc>, window_params = [{transform_indices = @transform_0, window_bounds = array<i64: 256, 512>}, {pipeline_mode = #tpu.pipeline_mode<synchronous>, transform_indices = @transform_1, window_bounds = array<i64: 512, 128>}, {pipeline_mode = #tpu.pipeline_mode<synchronous>, transform_indices = @transform_2, window_bounds = array<i64: 1, 128>}, {pipeline_mode = #tpu.pipeline_mode<synchronous>, transform_indices = @transform_3, window_bounds = array<i64: 128, 128>}, {transform_indices = @transform_4, window_bounds = array<i64: 256, 128>}]} {
    %c0 = arith.constant 0 : index
    %c0_0 = arith.constant 0 : index
    %0 = vector.load %arg1[%c0, %c0_0] : memref<256x512xbf16, #tpu.memory_space<vmem>>, vector<256x512xbf16>
    %c0_1 = arith.constant 0 : index
    %c0_2 = arith.constant 0 : index
    %1 = vector.load %arg2[%c0_1, %c0_2] : memref<512x128xbf16, #tpu.memory_space<vmem>>, vector<512x128xbf16>
    %cst = arith.constant dense<0.000000e+00> : vector<256x128xf32>
    %2 = tpu.matmul %0, %1, %cst {dimension_numbers = #tpu.dot_dimension_numbers<[1], [0], [0], [1], [0, 0, 1, 1], [], []>} : vector<256x512xbf16>, vector<512x128xbf16>, vector<256x128xf32> -> vector<256x128xf32>
    %c0_3 = arith.constant 0 : index
    %c0_4 = arith.constant 0 : index
    %3 = vector.load %arg3[%c0_3, %c0_4] : memref<1x128xf32, #tpu.memory_space<vmem>>, vector<1x128xf32>
    %4 = vector.broadcast %3 : vector<1x128xf32> to vector<256x128xf32>
    %5 = arith.addf %2, %4 : vector<256x128xf32>
    %cst_5 = arith.constant 0.000000e+00 : f32
    %6 = vector.broadcast %cst_5 : f32 to vector<256x128xf32>
    %7 = arith.maximumf %5, %6 : vector<256x128xf32>
    %8 = arith.truncf %7 : vector<256x128xf32> to vector<256x128xbf16>
    %c0_6 = arith.constant 0 : index
    %c0_7 = arith.constant 0 : index
    %9 = vector.load %arg4[%c0_6, %c0_7] : memref<128x128xbf16, #tpu.memory_space<vmem>>, vector<128x128xbf16>
    %cst_8 = arith.constant dense<0.000000e+00> : vector<256x128xf32>
    %10 = tpu.matmul %8, %9, %cst_8 {dimension_numbers = #tpu.dot_dimension_numbers<[1], [0], [0], [1], [0, 0, 1, 1], [], []>} : vector<256x128xbf16>, vector<128x128xbf16>, vector<256x128xf32> -> vector<256x128xf32>
    %11 = arith.truncf %10 : vector<256x128xf32> to vector<256x128xbf16>
    %c0_9 = arith.constant 0 : index
    %c0_10 = arith.constant 0 : index
    %12 = vector.load %arg5[%c0_9, %c0_10] : memref<256x128xbf16, #tpu.memory_space<vmem>>, vector<256x128xbf16>
    tpu.vector_store %arg5[%c0_9, %c0_10], %11 {strides = array<i32>} : memref<256x128xbf16, #tpu.memory_space<vmem>>, vector<256x128xbf16>,
    return
  }
  func.func @transform_0(%arg0: i32) -> (i32, i32) {
    %c0_i32 = arith.constant 0 : i32
    %c0_i32_0 = arith.constant 0 : i32
    return %arg0, %c0_i32 : i32, i32
  }
  func.func @transform_1(%arg0: i32) -> (i32, i32) {
    %c0_i32 = arith.constant 0 : i32
    %c0_i32_0 = arith.constant 0 : i32
    %c0_i32_1 = arith.constant 0 : i32
    return %c0_i32, %c0_i32_0 : i32, i32
  }
  func.func @transform_2(%arg0: i32) -> (i32, i32) {
    %c0_i32 = arith.constant 0 : i32
    %c0_i32_0 = arith.constant 0 : i32
    %c0_i32_1 = arith.constant 0 : i32
    return %c0_i32, %c0_i32_0 : i32, i32
  }
  func.func @transform_3(%arg0: i32) -> (i32, i32) {
    %c0_i32 = arith.constant 0 : i32
    %c0_i32_0 = arith.constant 0 : i32
    %c0_i32_1 = arith.constant 0 : i32
    return %c0_i32, %c0_i32_0 : i32, i32
  }
  func.func @transform_4(%arg0: i32) -> (i32, i32) {
    %c0_i32 = arith.constant 0 : i32
    %c0_i32_0 = arith.constant 0 : i32
    return %arg0, %c0_i32 : i32, i32
  }
}

module attributes {stable_mosaic.version = 11 : i64} {
  func.func @_agg_bias_kernel(%arg0: i32, %arg1: memref<256x512xbf16, #tpu.memory_space<vmem>>, %arg2: memref<512x128xbf16, #tpu.memory_space<vmem>>, %arg3: memref<1x128xf32, #tpu.memory_space<vmem>>, %arg4: memref<256x128xf32, #tpu.memory_space<vmem>>) attributes {dimension_semantics = [#tpu.dimension_semantics<parallel>], iteration_bounds = array<i64: 2>, scalar_prefetch = 0 : i64, scratch_operands = 0 : i64, tpu.core_type = #tpu.core_type<tc>, window_params = [{transform_indices = @transform_0, window_bounds = array<i64: 256, 512>}, {pipeline_mode = #tpu.pipeline_mode<synchronous>, transform_indices = @transform_1, window_bounds = array<i64: 512, 128>}, {pipeline_mode = #tpu.pipeline_mode<synchronous>, transform_indices = @transform_2, window_bounds = array<i64: 1, 128>}, {transform_indices = @transform_3, window_bounds = array<i64: 256, 128>}]} {
    %c0 = arith.constant 0 : index
    %c0_0 = arith.constant 0 : index
    %0 = vector.load %arg1[%c0, %c0_0] : memref<256x512xbf16, #tpu.memory_space<vmem>>, vector<256x512xbf16>
    %c0_1 = arith.constant 0 : index
    %c0_2 = arith.constant 0 : index
    %1 = vector.load %arg2[%c0_1, %c0_2] : memref<512x128xbf16, #tpu.memory_space<vmem>>, vector<512x128xbf16>
    %cst = arith.constant dense<0.000000e+00> : vector<256x128xf32>
    %2 = tpu.matmul %0, %1, %cst {dimension_numbers = #tpu.dot_dimension_numbers<[1], [0], [0], [1], [0, 0, 1, 1], [], []>} : vector<256x512xbf16>, vector<512x128xbf16>, vector<256x128xf32> -> vector<256x128xf32>
    %c0_3 = arith.constant 0 : index
    %c0_4 = arith.constant 0 : index
    %3 = vector.load %arg3[%c0_3, %c0_4] : memref<1x128xf32, #tpu.memory_space<vmem>>, vector<1x128xf32>
    %4 = vector.broadcast %3 : vector<1x128xf32> to vector<256x128xf32>
    %5 = arith.addf %2, %4 : vector<256x128xf32>
    %c0_5 = arith.constant 0 : index
    %c0_6 = arith.constant 0 : index
    %6 = vector.load %arg4[%c0_5, %c0_6] : memref<256x128xf32, #tpu.memory_space<vmem>>, vector<256x128xf32>
    tpu.vector_store %arg4[%c0_5, %c0_6], %5 {strides = array<i32>} : memref<256x128xf32, #tpu.memory_space<vmem>>, vector<256x128xf32>,
    return
  }
  func.func @transform_0(%arg0: i32) -> (i32, i32) {
    %c0_i32 = arith.constant 0 : i32
    %c0_i32_0 = arith.constant 0 : i32
    return %arg0, %c0_i32 : i32, i32
  }
  func.func @transform_1(%arg0: i32) -> (i32, i32) {
    %c0_i32 = arith.constant 0 : i32
    %c0_i32_0 = arith.constant 0 : i32
    %c0_i32_1 = arith.constant 0 : i32
    return %c0_i32, %c0_i32_0 : i32, i32
  }
  func.func @transform_2(%arg0: i32) -> (i32, i32) {
    %c0_i32 = arith.constant 0 : i32
    %c0_i32_0 = arith.constant 0 : i32
    %c0_i32_1 = arith.constant 0 : i32
    return %c0_i32, %c0_i32_0 : i32, i32
  }
  func.func @transform_3(%arg0: i32) -> (i32, i32) {
    %c0_i32 = arith.constant 0 : i32
    %c0_i32_0 = arith.constant 0 : i32
    return %arg0, %c0_i32 : i32, i32
  }
}

module attributes {stable_mosaic.version = 11 : i64} {
  func.func @_transform_kernel(%arg0: i32, %arg1: memref<256x128xbf16, #tpu.memory_space<vmem>>, %arg2: memref<128x128xbf16, #tpu.memory_space<vmem>>, %arg3: memref<256x128xbf16, #tpu.memory_space<vmem>>) attributes {dimension_semantics = [#tpu.dimension_semantics<parallel>], iteration_bounds = array<i64: 2>, scalar_prefetch = 0 : i64, scratch_operands = 0 : i64, tpu.core_type = #tpu.core_type<tc>, window_params = [{transform_indices = @transform_0, window_bounds = array<i64: 256, 128>}, {pipeline_mode = #tpu.pipeline_mode<synchronous>, transform_indices = @transform_1, window_bounds = array<i64: 128, 128>}, {transform_indices = @transform_2, window_bounds = array<i64: 256, 128>}]} {
    %c0 = arith.constant 0 : index
    %c0_0 = arith.constant 0 : index
    %0 = vector.load %arg1[%c0, %c0_0] : memref<256x128xbf16, #tpu.memory_space<vmem>>, vector<256x128xbf16>
    %c0_1 = arith.constant 0 : index
    %c0_2 = arith.constant 0 : index
    %1 = vector.load %arg2[%c0_1, %c0_2] : memref<128x128xbf16, #tpu.memory_space<vmem>>, vector<128x128xbf16>
    %cst = arith.constant dense<0.000000e+00> : vector<256x128xf32>
    %2 = tpu.matmul %0, %1, %cst {dimension_numbers = #tpu.dot_dimension_numbers<[1], [0], [0], [1], [0, 0, 1, 1], [], []>} : vector<256x128xbf16>, vector<128x128xbf16>, vector<256x128xf32> -> vector<256x128xf32>
    %3 = arith.truncf %2 : vector<256x128xf32> to vector<256x128xbf16>
    %c0_3 = arith.constant 0 : index
    %c0_4 = arith.constant 0 : index
    %4 = vector.load %arg3[%c0_3, %c0_4] : memref<256x128xbf16, #tpu.memory_space<vmem>>, vector<256x128xbf16>
    tpu.vector_store %arg3[%c0_3, %c0_4], %3 {strides = array<i32>} : memref<256x128xbf16, #tpu.memory_space<vmem>>, vector<256x128xbf16>,
    return
  }
  func.func @transform_0(%arg0: i32) -> (i32, i32) {
    %c0_i32 = arith.constant 0 : i32
    %c0_i32_0 = arith.constant 0 : i32
    return %arg0, %c0_i32 : i32, i32
  }
  func.func @transform_1(%arg0: i32) -> (i32, i32) {
    %c0_i32 = arith.constant 0 : i32
    %c0_i32_0 = arith.constant 0 : i32
    %c0_i32_1 = arith.constant 0 : i32
    return %c0_i32, %c0_i32_0 : i32, i32
  }
  func.func @transform_2(%arg0: i32) -> (i32, i32) {
    %c0_i32 = arith.constant 0 : i32
    %c0_i32_0 = arith.constant 0 : i32
    return %arg0, %c0_i32 : i32, i32
  }
}

</mosaic_0001>

<bundles_post_ra>
// kernel: gcn_encoder_forward.5
= control target key start
LH: loop header
LB: loop body
LE: loop exit
PB: predicated region body
PF: predicated region fallthrough
CT: control target
= control target key end

     0   :  { %8 = vsyncpa [#allocation3], 0  ;;  %s2182_s0 = inlined_call_operand.vmem [shape: bf16[512,512], index: 0, kind: input, shape index: {}]   ;;  %s2183_s1 = inlined_call_operand.vmem [shape: bf16[512,128], index: 1, kind: input, shape index: {}]   ;;  %s2184_s2 = inlined_call_operand.vmem [shape: f32[1,128], index: 2, kind: input, shape index: {}]   ;;  %s2185_s3 = inlined_call_operand.hbm [shape: f32[512,128], index: 3, kind: output, shape index: {}]  }
   0x1   :  { %10 = vsyncpa [#allocation3 + $0x1], 0  ;;  %s1843_s12 = smov 0   ;;  %s1845_s13 = smov 0  }
   0x2   :  { %s1847_s14 = smov 0   ;;  %s1849_s15 = smov 0  }
   0x3 LB: > { %s1864_s16 = sadd.s32 4294967295, %s1818_s15   ;;  %s1253_s17 = sadd.s32 4294967294, %s1818_s15   ;;  %s1818_s15 = sphi %s1849_s15, %s2191_s15   ;;  %s1814_s14 = sphi %s1847_s14, %s2190_s14   ;;  %s1810_s13 = sphi %s1845_s13, %s2189_s13   ;;  %s1806_s12 = sphi %s1843_s12, %s2188_s12  }
   0x4   : > { %s1868_s18 = sadd.s32 1, %s1818_s15   ;;  %s91_s19 = sadd.s32 1, %s1814_s14 }
   0x5   : > { %s88_s20 = ssub.s32 %s1818_s15, %s1868_s18  ;;  %p101_p0 = scmp.ne.s32.totalorder %s1814_s14, %s1810_s13 }
   0x6   : > { %p89_p1 = scmp.eq.s32.totalorder %s88_s20, 0  ;;  %p102_p2 = scmp.eq.s32.totalorder %s1864_s16, 1 }
   0x7   : > { %p107_p3 = scmp.ne.s32.totalorder %s1810_s13, %s1806_s12  ;;  %p108_p4 = scmp.eq.s32.totalorder %s1253_s17, 1 }
   0x8   : > { %s1879_s21 = scalar_select %p89_p1, %s1814_s14, %s91_s19  }
   0x9   : > { %p1881_p5 = por %p102_p2, %p101_p0  ;;  %p1885_p6 = por %p108_p4, %p107_p3 }
   0xa   : > { %p1256_p7 = scmp.ge.s32.totalorder %s1818_s15, 1  ;;  %p142_p8 = scmp.lt.s32.totalorder %s1818_s15, 3 }
   0xc   : > { %p143_p9 = pnand %p1256_p7, %p142_p8 }
   0xd   : > { %s1258_s11 = sshll.u32 (!%p143_p9), %s1864_s16, 5  ;;  %s164_s19 = sand.u32 (!%p143_p9), 1, %s1810_s13  }
   0xe   : > { %146 = sbr.rel (%p143_p9) target bundleno = 392 (0x188), region = 32  ;;  %p168_p10 = scmp.lt.s32.totalorder (!%p143_p9), %s1258_s11, 63 }
   0xf   : > { %s1257_s25 = sshll.u32 (!%p143_p9), %s164_s19, 8  ;;  %s1364_s27 = sshll.u32 (!%p143_p9), %s1864_s16, 12 }
  0x10   : > { %s2135_s4 = scalar_lea.hbm (!%p143_p9), %s2185_s3, %s1364_s27  ;;  %s2142_s5 = scalar_lea.sflag (!%p143_p9), [#allocation3], %s164_s19 }
  0x11   : > { %s1820_s6 = smov (!%p143_p9), [#allocation2]  }
  0x12   : > { %s1762_s7 = sshll.u32 (!%p143_p9), %s1820_s6, 4  ;;  %s1763_s7 = int_to_ptr.vmem [resolvable:$false] %s1762_s7 }
  0x13   : > { %v1630_v0 = vld [vmem:[%s2183_s1 + $0x78] sm:$0xff]   ;;  %v1634_v4 = vld [vmem:[%s2183_s1 + $0x70] sm:$0xff]   ;;  %v1638_v8 = vld [vmem:[%s2183_s1 + $0x68] sm:$0xff]   ;;  %s2193_s11 = smov (!%p168_p10, %s1258_s11), 63 }
  0x14   : > { %v1631_v1 = vld [vmem:[%s2183_s1 + $0xf8] sm:$0xff]   ;;  %1365 = vmatprep.subr.bf16.mxu0 %v1630_v0  ;;  %v1635_v5 = vld [vmem:[%s2183_s1 + $0xf0] sm:$0xff]   ;;  %v1639_v9 = vld [vmem:[%s2183_s1 + $0xe8] sm:$0xff]   ;;  %s1363_s26 = sshll.u32 %s2193_s11, 4 }
  0x15   : > { %v1632_v2 = vld [vmem:[%s2183_s1 + $0x38] sm:$0xff]   ;;  %1477 = vmatprep.subr.bf16.mxu1 %v1631_v1  ;;  %v1636_v6 = vld [vmem:[%s2183_s1 + $0x30] sm:$0xff]   ;;  %v1640_v10 = vld [vmem:[%s2183_s1 + $0x28] sm:$0xff]   ;;  %s1985_s8 = scalar_lea.vmem %s2182_s0, %s1363_s26  ;;  %s2066_s26 = scalar_lea.vmem [#allocation2], %s1257_s25 }
  0x16   : > { %v1633_v3 = vld [vmem:[%s2183_s1 + $0xb8] sm:$0xff]   ;;  %1366 = vmatpush3.bf16.msra.mxu0 %v1632_v2  ;;  %v1637_v7 = vld [vmem:[%s2183_s1 + $0xb0] sm:$0xff]   ;;  %v1641_v11 = vld [vmem:[%s2183_s1 + $0xa8] sm:$0xff]   ;;  %s1191_s28 = sshll.u32 %s2066_s26, 4  ;;  %s2137_s28 = int_to_ptr.vmem [resolvable:$true] %s1191_s28 }
  0x17   : > { %1478 = vmatpush3.bf16.msra.mxu1 %v1633_v3  ;;  %1367 = vmatprep.subr.bf16.mxu0 %v1634_v4  ;;  %v1642_v12 = vld [vmem:[%s2183_s1 + $0x60] sm:$0xff]   ;;  %v1646_v16 = vld [vmem:[%s2183_s1 + $0x58] sm:$0xff]   ;;  %v1650_v20 = vld [vmem:[%s2183_s1 + $0x50] sm:$0xff]   ;;  %s1758_s16 = scalar_lea.vmem %s2137_s28, 4096  ;;  %p1765_p0 = scmp.lt.s32.totalorder %s2137_s28, %s1763_s7 }
  0x18   : > { %1479 = vmatprep.subr.bf16.mxu1 %v1635_v5  ;;  %v1643_v13 = vld [vmem:[%s2183_s1 + $0xe0] sm:$0xff]   ;;  %v1647_v17 = vld [vmem:[%s2183_s1 + $0xd8] sm:$0xff]   ;;  %v1651_v21 = vld [vmem:[%s2183_s1 + $0xd0] sm:$0xff]   ;;  %p1759_p11 = scmp.ne.s32.totalorder %s2137_s28, %s1758_s16 }
  0x19   : > { %v1644_v14 = vld [vmem:[%s2183_s1 + $0x20] sm:$0xff]   ;;  %v1648_v18 = vld [vmem:[%s2183_s1 + $0x18] sm:$0xff]   ;;  %v1652_v22 = vld [vmem:[%s2183_s1 + $0x10] sm:$0xff]  }
  0x1a   : > { %1368 = vmatpush3.bf16.msra.mxu0 %v1636_v6  ;;  %v1645_v15 = vld [vmem:[%s2183_s1 + $0xa0] sm:$0xff]   ;;  %v1649_v19 = vld [vmem:[%s2183_s1 + $0x98] sm:$0xff]   ;;  %v1653_v23 = vld [vmem:[%s2183_s1 + $0x90] sm:$0xff]   ;;  %p1760_p12 = pnand %p1759_p11, %p1881_p5 }
  0x1b   : > { %1480 = vmatpush3.bf16.msra.mxu1 %v1637_v7  ;;  %1369 = vmatprep.subr.bf16.mxu0 %v1638_v8  ;;  %v1654_v24 = vld [vmem:[%s2183_s1 + $0x48] sm:$0xff]   ;;  %v1658_v28 = vld [vmem:[%s2183_s1 + $0x40] sm:$0xff]  }
  0x1c   : > { %1481 = vmatprep.subr.bf16.mxu1 %v1639_v9  ;;  %v1655_v25 = vld [vmem:[%s2183_s1 + $0xc8] sm:$0xff]   ;;  %v1659_v29 = vld [vmem:[%s2183_s1 + $0xc0] sm:$0xff]   ;;  %p1761_p13 = pneg %p1760_p12 }
  0x1d   : > { %v1656_v26 = vld [vmem:[%s2183_s1 + $0x8] sm:$0xff]   ;;  %v1660_v30 = vld [vmem:[%s2183_s1] sm:$0xff]  }
  0x1e   : > { %1370 = vmatpush3.bf16.msra.mxu0 %v1640_v10  ;;  %v1657_v27 = vld [vmem:[%s2183_s1 + $0x88] sm:$0xff]   ;;  %v1661_v31 = vld [vmem:[%s2183_s1 + $0x80] sm:$0xff]  }
  0x1f   : > { %1482 = vmatpush3.bf16.msra.mxu1 %v1641_v11  ;;  %1371 = vmatprep.subr.bf16.mxu0 %v1642_v12  ;;  %v1662_v32 = vld [vmem:[%s1985_s8] ss:$16 sps:$4 sm:$0xff]   ;;  %v1664_v33 = vld [vmem:[%s1985_s8 + $0x4] ss:$16 sps:$4 sm:$0xff]   ;;  %v1665_v34 = vld [vmem:[%s1985_s8 + $0x8] ss:$16 sps:$4 sm:$0xff]  }
  0x20   : > { %1483 = vmatprep.subr.bf16.mxu1 %v1643_v13  ;;  %v1667_v35 = vld [vmem:[%s1985_s8 + $0xc] ss:$16 sps:$4 sm:$0xff]   ;;  %855 = vmatprep.mubr.bf16.mxu0 %v1664_v33  ;;  %v1668_v36 = vld [vmem:[%s1985_s8 + $0x24] ss:$16 sps:$4 sm:$0xff]   ;;  %v1672_v38 = vld [vmem:[%s1985_s8 + $0x20] ss:$16 sps:$4 sm:$0xff]  }
  0x21   : > { %1016 = vmatprep.mubr.bf16.mxu1 %v1667_v35  ;;  %v1670_v37 = vld [vmem:[%s1985_s8 + $0x2c] ss:$16 sps:$4 sm:$0xff]   ;;  %v1673_v39 = vld [vmem:[%s1985_s8 + $0x28] ss:$16 sps:$4 sm:$0xff]   ;;  %v1674_v40 = vld [vmem:[%s1985_s8 + $0x44] ss:$16 sps:$4 sm:$0xff]  }
  0x22   : > { %1372 = vmatpush3.bf16.msra.mxu0 %v1644_v14  ;;  %v1676_v41 = vld [vmem:[%s1985_s8 + $0x4c] ss:$16 sps:$4 sm:$0xff]   ;;  %v1678_v42 = vld [vmem:[%s1985_s8 + $0x40] ss:$16 sps:$4 sm:$0xff]   ;;  %v1679_v43 = vld [vmem:[%s1985_s8 + $0x48] ss:$16 sps:$4 sm:$0xff]  }
  0x23   : > { %1484 = vmatpush3.bf16.msra.mxu1 %v1645_v15  ;;  %1373 = vmatprep.subr.bf16.mxu0 %v1646_v16  ;;  %v1680_v44 = vld [vmem:[%s1985_s8 + $0x64] ss:$16 sps:$4 sm:$0xff]   ;;  %v1682_v45 = vld [vmem:[%s1985_s8 + $0x6c] ss:$16 sps:$4 sm:$0xff]   ;;  %v1684_v46 = vld [vmem:[%s1985_s8 + $0x60] ss:$16 sps:$4 sm:$0xff]  }
  0x24   : > { %1485 = vmatprep.subr.bf16.mxu1 %v1647_v17  ;;  %v1685_v47 = vld [vmem:[%s1985_s8 + $0x68] ss:$16 sps:$4 sm:$0xff]   ;;  %v1686_v48 = vld [vmem:[%s1985_s8 + $0x84] ss:$16 sps:$4 sm:$0xff]   ;;  %v1688_v49 = vld [vmem:[%s1985_s8 + $0x8c] ss:$16 sps:$4 sm:$0xff]  }
  0x25   : > { %v1690_v50 = vld [vmem:[%s1985_s8 + $0x80] ss:$16 sps:$4 sm:$0xff]   ;;  %v1691_v51 = vld [vmem:[%s1985_s8 + $0x88] ss:$16 sps:$4 sm:$0xff]   ;;  %v1692_v52 = vld [vmem:[%s1985_s8 + $0xa4] ss:$16 sps:$4 sm:$0xff]  }
  0x26   : > { %1374 = vmatpush3.bf16.msra.mxu0 %v1648_v18  ;;  %v1694_v53 = vld [vmem:[%s1985_s8 + $0xac] ss:$16 sps:$4 sm:$0xff]   ;;  %v1696_v54 = vld [vmem:[%s1985_s8 + $0xa0] ss:$16 sps:$4 sm:$0xff]   ;;  %v1697_v55 = vld [vmem:[%s1985_s8 + $0xa8] ss:$16 sps:$4 sm:$0xff]  }
  0x27   : > { %1486 = vmatpush3.bf16.msra.mxu1 %v1649_v19  ;;  %1375 = vmatprep.subr.bf16.mxu0 %v1650_v20  ;;  %v1698_v56 = vld [vmem:[%s1985_s8 + $0xc4] ss:$16 sps:$4 sm:$0xff]   ;;  %v1700_v57 = vld [vmem:[%s1985_s8 + $0xcc] ss:$16 sps:$4 sm:$0xff]   ;;  %v1702_v58 = vld [vmem:[%s1985_s8 + $0xc0] ss:$16 sps:$4 sm:$0xff]  }
  0x28   : > { %1487 = vmatprep.subr.bf16.mxu1 %v1651_v21  ;;  %v1703_v59 = vld [vmem:[%s1985_s8 + $0xc8] ss:$16 sps:$4 sm:$0xff]   ;;  %v1704_v60 = vld [vmem:[%s1985_s8 + $0xe4] ss:$16 sps:$4 sm:$0xff]   ;;  %v1706_v61 = vld [vmem:[%s1985_s8 + $0xec] ss:$16 sps:$4 sm:$0xff]  }
  0x29   : > { %v1708_v62 = vld [vmem:[%s1985_s8 + $0xe0] ss:$16 sps:$4 sm:$0xff]   ;;  %v1709_v63 = vld [vmem:[%s1985_s8 + $0xe8] ss:$16 sps:$4 sm:$0xff]   ;;  %v1710_v0 = vld [vmem:[%s1985_s8 + $0x104] ss:$16 sps:$4 sm:$0xff]  }
  0x2a   : > { %1376 = vmatpush3.bf16.msra.mxu0 %v1652_v22  ;;  %v1712_v1 = vld [vmem:[%s1985_s8 + $0x10c] ss:$16 sps:$4 sm:$0xff]   ;;  %v1714_v2 = vld [vmem:[%s1985_s8 + $0x100] ss:$16 sps:$4 sm:$0xff]   ;;  %v1715_v3 = vld [vmem:[%s1985_s8 + $0x108] ss:$16 sps:$4 sm:$0xff]  }
  0x2b   : > { %1488 = vmatpush3.bf16.msra.mxu1 %v1653_v23  ;;  %1377 = vmatprep.subr.bf16.mxu0 %v1654_v24  ;;  %v1716_v4 = vld [vmem:[%s1985_s8 + $0x124] ss:$16 sps:$4 sm:$0xff]   ;;  %v1718_v5 = vld [vmem:[%s1985_s8 + $0x12c] ss:$16 sps:$4 sm:$0xff]   ;;  %v1720_v6 = vld [vmem:[%s1985_s8 + $0x120] ss:$16 sps:$4 sm:$0xff]  }
  0x2c   : > { %1489 = vmatprep.subr.bf16.mxu1 %v1655_v25  ;;  %v1721_v7 = vld [vmem:[%s1985_s8 + $0x128] ss:$16 sps:$4 sm:$0xff]   ;;  %v1722_v8 = vld [vmem:[%s1985_s8 + $0x144] ss:$16 sps:$4 sm:$0xff]   ;;  %v1724_v9 = vld [vmem:[%s1985_s8 + $0x14c] ss:$16 sps:$4 sm:$0xff]  }
  0x2d   : > { %v1726_v10 = vld [vmem:[%s1985_s8 + $0x140] ss:$16 sps:$4 sm:$0xff]   ;;  %v1727_v11 = vld [vmem:[%s1985_s8 + $0x148] ss:$16 sps:$4 sm:$0xff]   ;;  %v1728_v12 = vld [vmem:[%s1985_s8 + $0x164] ss:$16 sps:$4 sm:$0xff]  }
  0x2e   : > { %1378 = vmatpush3.bf16.msra.mxu0 %v1656_v26  ;;  %v1730_v13 = vld [vmem:[%s1985_s8 + $0x16c] ss:$16 sps:$4 sm:$0xff]   ;;  %v1732_v14 = vld [vmem:[%s1985_s8 + $0x160] ss:$16 sps:$4 sm:$0xff]   ;;  %v1733_v15 = vld [vmem:[%s1985_s8 + $0x168] ss:$16 sps:$4 sm:$0xff]  }
  0x2f   : > { %1490 = vmatpush3.bf16.msra.mxu1 %v1657_v27  ;;  %1379 = vmatprep.subr.bf16.mxu0 %v1658_v28  ;;  %v1734_v16 = vld [vmem:[%s1985_s8 + $0x184] ss:$16 sps:$4 sm:$0xff]   ;;  %v1736_v17 = vld [vmem:[%s1985_s8 + $0x18c] ss:$16 sps:$4 sm:$0xff]   ;;  %v1738_v18 = vld [vmem:[%s1985_s8 + $0x180] ss:$16 sps:$4 sm:$0xff]  }
  0x30   : > { %1491 = vmatprep.subr.bf16.mxu1 %v1659_v29  ;;  %v1739_v19 = vld [vmem:[%s1985_s8 + $0x188] ss:$16 sps:$4 sm:$0xff]   ;;  %v1740_v20 = vld [vmem:[%s1985_s8 + $0x1a4] ss:$16 sps:$4 sm:$0xff]   ;;  %v1742_v21 = vld [vmem:[%s1985_s8 + $0x1ac] ss:$16 sps:$4 sm:$0xff]  }
  0x31   : > { %v1744_v22 = vld [vmem:[%s1985_s8 + $0x1a0] ss:$16 sps:$4 sm:$0xff]   ;;  %v1745_v23 = vld [vmem:[%s1985_s8 + $0x1a8] ss:$16 sps:$4 sm:$0xff]   ;;  %v1746_v24 = vld [vmem:[%s1985_s8 + $0x1c4] ss:$16 sps:$4 sm:$0xff]  }
  0x32   : > { %1380 = vmatpush3.bf16.msra.mxu0 %v1660_v30  ;;  %v1748_v25 = vld [vmem:[%s1985_s8 + $0x1cc] ss:$16 sps:$4 sm:$0xff]   ;;  %v1750_v26 = vld [vmem:[%s1985_s8 + $0x1c0] ss:$16 sps:$4 sm:$0xff]   ;;  %v1751_v27 = vld [vmem:[%s1985_s8 + $0x1c8] ss:$16 sps:$4 sm:$0xff]  }
  0x33   : > { %1492 = vmatpush3.bf16.msra.mxu1 %v1661_v31  ;;  %v1752_v28 = vld [vmem:[%s1985_s8 + $0x1e4] ss:$16 sps:$4 sm:$0xff]   ;;  %v1754_v29 = vld [vmem:[%s1985_s8 + $0x1ec] ss:$16 sps:$4 sm:$0xff]   ;;  %v1756_v30 = vld [vmem:[%s1985_s8 + $0x1e0] ss:$16 sps:$4 sm:$0xff]  }
  0x34   : > { %v1757_v31 = vld [vmem:[%s1985_s8 + $0x1e8] ss:$16 sps:$4 sm:$0xff]   ;;  %s1764_s8 = scalar_lea.vmem %s1763_s7, 8192 }
  0x35   : > { %856 = vmatmul.mubr.bf16.vlgmr.msra.gmra.mxu0 %v1662_v32  ;;  %p1766_p1 = scmp.lt.s32.totalorder %s1764_s8, %s1758_s16 }
  0x36   : > { %1017 = vmatmul.mubr.bf16.vlgmr.msra.gmra.mxu1 %v1665_v34  ;;  %863 = vmatprep.mubr.bf16.mxu0 %v1668_v36  ;;  %v2061_v34 = vld [vmem:[%s2184_s2] ss:$0 sm:$0xff] }
  0x37   : > { %1024 = vmatprep.mubr.bf16.mxu1 %v1670_v37  ;;  %p1767_p2 = por %p1766_p1, %p1765_p0 }
  0x39   : > { %p1768_p3 = pnand %p1767_p2, %p1761_p13 }
  0x3d   : > { %864 = vmatmul.mubr.bf16.gmra.mxu0 %v1672_v38 }
  0x3e   : > { %1025 = vmatmul.mubr.bf16.gmra.mxu1 %v1673_v39  ;;  %871 = vmatprep.mubr.bf16.mxu0 %v1674_v40 }
  0x3f   : > { %1032 = vmatprep.mubr.bf16.mxu1 %v1676_v41 }
  0x45   : > { %872 = vmatmul.mubr.bf16.gmra.mxu0 %v1678_v42 }
  0x46   : > { %1033 = vmatmul.mubr.bf16.gmra.mxu1 %v1679_v43  ;;  %879 = vmatprep.mubr.bf16.mxu0 %v1680_v44 }
  0x47   : > { %1040 = vmatprep.mubr.bf16.mxu1 %v1682_v45 }
  0x4d   : > { %880 = vmatmul.mubr.bf16.gmra.mxu0 %v1684_v46 }
  0x4e   : > { %1041 = vmatmul.mubr.bf16.gmra.mxu1 %v1685_v47  ;;  %887 = vmatprep.mubr.bf16.mxu0 %v1686_v48 }
  0x4f   : > { %1048 = vmatprep.mubr.bf16.mxu1 %v1688_v49 }
  0x55   : > { %888 = vmatmul.mubr.bf16.gmra.mxu0 %v1690_v50 }
  0x56   : > { %1049 = vmatmul.mubr.bf16.gmra.mxu1 %v1691_v51  ;;  %895 = vmatprep.mubr.bf16.mxu0 %v1692_v52 }
  0x57   : > { %1056 = vmatprep.mubr.bf16.mxu1 %v1694_v53 }
  0x5d   : > { %896 = vmatmul.mubr.bf16.gmra.mxu0 %v1696_v54 }
  0x5e   : > { %1057 = vmatmul.mubr.bf16.gmra.mxu1 %v1697_v55  ;;  %903 = vmatprep.mubr.bf16.mxu0 %v1698_v56 }
  0x5f   : > { %1064 = vmatprep.mubr.bf16.mxu1 %v1700_v57 }
  0x65   : > { %904 = vmatmul.mubr.bf16.gmra.mxu0 %v1702_v58 }
  0x66   : > { %1065 = vmatmul.mubr.bf16.gmra.mxu1 %v1703_v59  ;;  %911 = vmatprep.mubr.bf16.mxu0 %v1704_v60 }
  0x67   : > { %1072 = vmatprep.mubr.bf16.mxu1 %v1706_v61 }
  0x6d   : > { %912 = vmatmul.mubr.bf16.gmra.mxu0 %v1708_v62 }
  0x6e   : > { %1073 = vmatmul.mubr.bf16.gmra.mxu1 %v1709_v63  ;;  %919 = vmatprep.mubr.bf16.mxu0 %v1710_v0 }
  0x6f   : > { %1080 = vmatprep.mubr.bf16.mxu1 %v1712_v1 }
  0x75   : > { %920 = vmatmul.mubr.bf16.gmra.mxu0 %v1714_v2 }
  0x76   : > { %1081 = vmatmul.mubr.bf16.gmra.mxu1 %v1715_v3  ;;  %927 = vmatprep.mubr.bf16.mxu0 %v1716_v4 }
  0x77   : > { %1088 = vmatprep.mubr.bf16.mxu1 %v1718_v5 }
  0x7d   : > { %928 = vmatmul.mubr.bf16.gmra.mxu0 %v1720_v6 }
  0x7e   : > { %1089 = vmatmul.mubr.bf16.gmra.mxu1 %v1721_v7  ;;  %935 = vmatprep.mubr.bf16.mxu0 %v1722_v8 }
  0x7f   : > { %1096 = vmatprep.mubr.bf16.mxu1 %v1724_v9 }
  0x85   : > { %936 = vmatmul.mubr.bf16.gmra.mxu0 %v1726_v10 }
  0x86   : > { %1097 = vmatmul.mubr.bf16.gmra.mxu1 %v1727_v11  ;;  %943 = vmatprep.mubr.bf16.mxu0 %v1728_v12 }
  0x87   : > { %1104 = vmatprep.mubr.bf16.mxu1 %v1730_v13 }
  0x8d   : > { %944 = vmatmul.mubr.bf16.gmra.mxu0 %v1732_v14 }
  0x8e   : > { %1105 = vmatmul.mubr.bf16.gmra.mxu1 %v1733_v15  ;;  %951 = vmatprep.mubr.bf16.mxu0 %v1734_v16 }
  0x8f   : > { %1112 = vmatprep.mubr.bf16.mxu1 %v1736_v17 }
  0x95   : > { %952 = vmatmul.mubr.bf16.gmra.mxu0 %v1738_v18 }
  0x96   : > { %1113 = vmatmul.mubr.bf16.gmra.mxu1 %v1739_v19  ;;  %959 = vmatprep.mubr.bf16.mxu0 %v1740_v20 }
  0x97   : > { %1120 = vmatprep.mubr.bf16.mxu1 %v1742_v21 }
  0x9d   : > { %960 = vmatmul.mubr.bf16.gmra.mxu0 %v1744_v22 }
  0x9e   : > { %1121 = vmatmul.mubr.bf16.gmra.mxu1 %v1745_v23  ;;  %967 = vmatprep.mubr.bf16.mxu0 %v1746_v24 }
  0x9f   : > { %1128 = vmatprep.mubr.bf16.mxu1 %v1748_v25 }
  0xa5   : > { %968 = vmatmul.mubr.bf16.gmra.mxu0 %v1750_v26 }
  0xa6   : > { %1129 = vmatmul.mubr.bf16.gmra.mxu1 %v1751_v27  ;;  %975 = vmatprep.mubr.bf16.mxu0 %v1752_v28 }
  0xa7   : > { %1136 = vmatprep.mubr.bf16.mxu1 %v1754_v29 }
  0xad   : > { %976 = vmatmul.mubr.bf16.gmra.mxu0 %v1756_v30 }
  0xae   : > { %1137 = vmatmul.mubr.bf16.gmra.mxu1 %v1757_v31 }
  0xf5   : > { %v1381_v32 = vpop.f32.mrf.mxu0 }
  0xf6   : > { %v1493_v33 = vpop.f32.mrf.mxu1 }
  0xf7   : > { %v1382_v35 = vpop.f32.mrf.mxu0 }
  0xf8   : > { %v1383_v36 = vadd.f32 %v1382_v35, %v1381_v32  ;;  %v1494_v37 = vpop.f32.mrf.mxu1 }
  0xf9   : > { %v1384_v38 = vpop.f32.mrf.mxu0  ;;  %v1495_v40 = vadd.f32 %v1494_v37, %v1493_v33 }
  0xfa   : > { %v858_v39 = vadd.f32 %v1383_v36, %v2061_v34  ;;  %v1496_v41 = vpop.f32.mrf.mxu1 }
  0xfb   : > { %v1385_v42 = vpop.f32.mrf.mxu0 }
  0xfc   : > { %v1019_v43 = vadd.f32 %v1495_v40, %v858_v39  ;;  %v1386_v44 = vadd.f32 %v1385_v42, %v1384_v38  ;;  %v1497_v45 = vpop.f32.mrf.mxu1 }
  0xfd   : > { %v1387_v46 = vpop.f32.mrf.mxu0  ;;  %v1498_v48 = vadd.f32 %v1497_v45, %v1496_v41 }
  0xfe   : > { %1145 = vst [vmem:[%s2066_s26] sm:$0xff] %v1019_v43  ;;  %v861_v47 = vadd.f32 %v1386_v44, %v2061_v34  ;;  %v1499_v49 = vpop.f32.mrf.mxu1 }
  0xff   : > { %v1388_v50 = vpop.f32.mrf.mxu0 }
 0x100   : > { %v1022_v51 = vadd.f32 %v1498_v48, %v861_v47  ;;  %v1389_v52 = vadd.f32 %v1388_v50, %v1387_v46  ;;  %v1500_v53 = vpop.f32.mrf.mxu1 }
 0x101   : > { %v1390_v54 = vpop.f32.mrf.mxu0  ;;  %v1501_v56 = vadd.f32 %v1500_v53, %v1499_v49 }
 0x102   : > { %1146 = vst [vmem:[%s2066_s26 + $0x8] sm:$0xff] %v1022_v51  ;;  %v866_v55 = vadd.f32 %v1389_v52, %v2061_v34  ;;  %v1502_v57 = vpop.f32.mrf.mxu1 }
 0x103   : > { %v1391_v58 = vpop.f32.mrf.mxu0 }
 0x104   : > { %v1027_v59 = vadd.f32 %v1501_v56, %v866_v55  ;;  %v1392_v60 = vadd.f32 %v1391_v58, %v1390_v54  ;;  %v1503_v61 = vpop.f32.mrf.mxu1 }
 0x105   : > { %v1393_v62 = vpop.f32.mrf.mxu0  ;;  %v1504_v0 = vadd.f32 %v1503_v61, %v1502_v57 }
 0x106   : > { %1147 = vst [vmem:[%s2066_s26 + $0x10] sm:$0xff] %v1027_v59  ;;  %v869_v63 = vadd.f32 %v1392_v60, %v2061_v34  ;;  %v1505_v1 = vpop.f32.mrf.mxu1 }
 0x107   : > { %v1394_v2 = vpop.f32.mrf.mxu0 }
 0x108   : > { %v1030_v3 = vadd.f32 %v1504_v0, %v869_v63  ;;  %v1395_v4 = vadd.f32 %v1394_v2, %v1393_v62  ;;  %v1506_v5 = vpop.f32.mrf.mxu1 }
 0x109   : > { %v1396_v6 = vpop.f32.mrf.mxu0  ;;  %v1507_v8 = vadd.f32 %v1506_v5, %v1505_v1 }
 0x10a   : > { %1148 = vst [vmem:[%s2066_s26 + $0x18] sm:$0xff] %v1030_v3  ;;  %v874_v7 = vadd.f32 %v1395_v4, %v2061_v34  ;;  %v1508_v9 = vpop.f32.mrf.mxu1 }
 0x10b   : > { %v1397_v10 = vpop.f32.mrf.mxu0 }
 0x10c   : > { %v1035_v11 = vadd.f32 %v1507_v8, %v874_v7  ;;  %v1398_v12 = vadd.f32 %v1397_v10, %v1396_v6  ;;  %v1509_v13 = vpop.f32.mrf.mxu1 }
 0x10d   : > { %v1399_v14 = vpop.f32.mrf.mxu0  ;;  %v1510_v16 = vadd.f32 %v1509_v13, %v1508_v9 }
 0x10e   : > { %1149 = vst [vmem:[%s2066_s26 + $0x20] sm:$0xff] %v1035_v11  ;;  %v877_v15 = vadd.f32 %v1398_v12, %v2061_v34  ;;  %v1511_v17 = vpop.f32.mrf.mxu1 }
 0x10f   : > { %v1400_v18 = vpop.f32.mrf.mxu0 }
 0x110   : > { %v1038_v19 = vadd.f32 %v1510_v16, %v877_v15  ;;  %v1401_v20 = vadd.f32 %v1400_v18, %v1399_v14  ;;  %v1512_v21 = vpop.f32.mrf.mxu1 }
 0x111   : > { %v1402_v22 = vpop.f32.mrf.mxu0  ;;  %v1513_v24 = vadd.f32 %v1512_v21, %v1511_v17 }
 0x112   : > { %1150 = vst [vmem:[%s2066_s26 + $0x28] sm:$0xff] %v1038_v19  ;;  %v882_v23 = vadd.f32 %v1401_v20, %v2061_v34  ;;  %v1514_v25 = vpop.f32.mrf.mxu1 }
 0x113   : > { %v1403_v26 = vpop.f32.mrf.mxu0 }
 0x114   : > { %v1043_v27 = vadd.f32 %v1513_v24, %v882_v23  ;;  %v1404_v28 = vadd.f32 %v1403_v26, %v1402_v22  ;;  %v1515_v29 = vpop.f32.mrf.mxu1 }
 0x115   : > { %v1405_v30 = vpop.f32.mrf.mxu0  ;;  %v1516_v32 = vadd.f32 %v1515_v29, %v1514_v25 }
 0x116   : > { %1151 = vst [vmem:[%s2066_s26 + $0x30] sm:$0xff] %v1043_v27  ;;  %v885_v31 = vadd.f32 %v1404_v28, %v2061_v34  ;;  %v1517_v33 = vpop.f32.mrf.mxu1 }
 0x117   : > { %v1406_v35 = vpop.f32.mrf.mxu0 }
 0x118   : > { %v1046_v36 = vadd.f32 %v1516_v32, %v885_v31  ;;  %v1407_v37 = vadd.f32 %v1406_v35, %v1405_v30  ;;  %v1518_v38 = vpop.f32.mrf.mxu1 }
 0x119   : > { %v1408_v39 = vpop.f32.mrf.mxu0  ;;  %v1519_v41 = vadd.f32 %v1518_v38, %v1517_v33 }
 0x11a   : > { %1152 = vst [vmem:[%s2066_s26 + $0x38] sm:$0xff] %v1046_v36  ;;  %v890_v40 = vadd.f32 %v1407_v37, %v2061_v34  ;;  %v1520_v42 = vpop.f32.mrf.mxu1 }
 0x11b   : > { %v1409_v43 = vpop.f32.mrf.mxu0 }
 0x11c   : > { %v1051_v44 = vadd.f32 %v1519_v41, %v890_v40  ;;  %v1410_v45 = vadd.f32 %v1409_v43, %v1408_v39  ;;  %v1521_v46 = vpop.f32.mrf.mxu1 }
 0x11d   : > { %v1411_v47 = vpop.f32.mrf.mxu0  ;;  %v1522_v49 = vadd.f32 %v1521_v46, %v1520_v42 }
 0x11e   : > { %1153 = vst [vmem:[%s2066_s26 + $0x40] sm:$0xff] %v1051_v44  ;;  %v893_v48 = vadd.f32 %v1410_v45, %v2061_v34  ;;  %v1523_v50 = vpop.f32.mrf.mxu1 }
 0x11f   : > { %v1412_v51 = vpop.f32.mrf.mxu0 }
 0x120   : > { %v1054_v52 = vadd.f32 %v1522_v49, %v893_v48  ;;  %v1413_v53 = vadd.f32 %v1412_v51, %v1411_v47  ;;  %v1524_v54 = vpop.f32.mrf.mxu1 }
 0x121   : > { %v1414_v55 = vpop.f32.mrf.mxu0  ;;  %v1525_v57 = vadd.f32 %v1524_v54, %v1523_v50 }
 0x122   : > { %1154 = vst [vmem:[%s2066_s26 + $0x48] sm:$0xff] %v1054_v52  ;;  %v898_v56 = vadd.f32 %v1413_v53, %v2061_v34  ;;  %v1526_v58 = vpop.f32.mrf.mxu1 }
 0x123   : > { %v1415_v59 = vpop.f32.mrf.mxu0 }
 0x124   : > { %v1059_v60 = vadd.f32 %v1525_v57, %v898_v56  ;;  %v1416_v61 = vadd.f32 %v1415_v59, %v1414_v55  ;;  %v1527_v62 = vpop.f32.mrf.mxu1 }
 0x125   : > { %v1417_v63 = vpop.f32.mrf.mxu0  ;;  %v1528_v1 = vadd.f32 %v1527_v62, %v1526_v58 }
 0x126   : > { %1155 = vst [vmem:[%s2066_s26 + $0x50] sm:$0xff] %v1059_v60  ;;  %v901_v0 = vadd.f32 %v1416_v61, %v2061_v34  ;;  %v1529_v2 = vpop.f32.mrf.mxu1 }
 0x127   : > { %v1418_v3 = vpop.f32.mrf.mxu0 }
 0x128   : > { %v1062_v4 = vadd.f32 %v1528_v1, %v901_v0  ;;  %v1419_v5 = vadd.f32 %v1418_v3, %v1417_v63  ;;  %v1530_v6 = vpop.f32.mrf.mxu1 }
 0x129   : > { %v1420_v7 = vpop.f32.mrf.mxu0  ;;  %v1531_v9 = vadd.f32 %v1530_v6, %v1529_v2 }
 0x12a   : > { %1156 = vst [vmem:[%s2066_s26 + $0x58] sm:$0xff] %v1062_v4  ;;  %v906_v8 = vadd.f32 %v1419_v5, %v2061_v34  ;;  %v1532_v10 = vpop.f32.mrf.mxu1 }
 0x12b   : > { %v1421_v11 = vpop.f32.mrf.mxu0 }
 0x12c   : > { %v1067_v12 = vadd.f32 %v1531_v9, %v906_v8  ;;  %v1422_v13 = vadd.f32 %v1421_v11, %v1420_v7  ;;  %v1533_v14 = vpop.f32.mrf.mxu1 }
 0x12d   : > { %v1423_v15 = vpop.f32.mrf.mxu0  ;;  %v1534_v17 = vadd.f32 %v1533_v14, %v1532_v10 }
 0x12e   : > { %1157 = vst [vmem:[%s2066_s26 + $0x60] sm:$0xff] %v1067_v12  ;;  %v909_v16 = vadd.f32 %v1422_v13, %v2061_v34  ;;  %v1535_v18 = vpop.f32.mrf.mxu1 }
 0x12f   : > { %v1424_v19 = vpop.f32.mrf.mxu0 }
 0x130   : > { %v1070_v20 = vadd.f32 %v1534_v17, %v909_v16  ;;  %v1425_v21 = vadd.f32 %v1424_v19, %v1423_v15  ;;  %v1536_v22 = vpop.f32.mrf.mxu1 }
 0x131   : > { %v1426_v23 = vpop.f32.mrf.mxu0  ;;  %v1537_v25 = vadd.f32 %v1536_v22, %v1535_v18 }
 0x132   : > { %1158 = vst [vmem:[%s2066_s26 + $0x68] sm:$0xff] %v1070_v20  ;;  %v914_v24 = vadd.f32 %v1425_v21, %v2061_v34  ;;  %v1538_v26 = vpop.f32.mrf.mxu1 }
 0x133   : > { %v1427_v27 = vpop.f32.mrf.mxu0 }
 0x134   : > { %v1075_v28 = vadd.f32 %v1537_v25, %v914_v24  ;;  %v1428_v29 = vadd.f32 %v1427_v27, %v1426_v23  ;;  %v1539_v30 = vpop.f32.mrf.mxu1 }
 0x135   : > { %v1429_v31 = vpop.f32.mrf.mxu0  ;;  %v1540_v33 = vadd.f32 %v1539_v30, %v1538_v26 }
 0x136   : > { %1159 = vst [vmem:[%s2066_s26 + $0x70] sm:$0xff] %v1075_v28  ;;  %v917_v32 = vadd.f32 %v1428_v29, %v2061_v34  ;;  %v1541_v35 = vpop.f32.mrf.mxu1 }
 0x137   : > { %v1430_v36 = vpop.f32.mrf.mxu0 }
 0x138   : > { %v1078_v37 = vadd.f32 %v1540_v33, %v917_v32  ;;  %v1431_v38 = vadd.f32 %v1430_v36, %v1429_v31  ;;  %v1542_v39 = vpop.f32.mrf.mxu1 }
 0x139   : > { %v1432_v40 = vpop.f32.mrf.mxu0  ;;  %v1543_v42 = vadd.f32 %v1542_v39, %v1541_v35 }
 0x13a   : > { %1160 = vst [vmem:[%s2066_s26 + $0x78] sm:$0xff] %v1078_v37  ;;  %v922_v41 = vadd.f32 %v1431_v38, %v2061_v34  ;;  %v1544_v43 = vpop.f32.mrf.mxu1 }
 0x13b   : > { %v1433_v44 = vpop.f32.mrf.mxu0 }
 0x13c   : > { %v1083_v45 = vadd.f32 %v1543_v42, %v922_v41  ;;  %v1434_v46 = vadd.f32 %v1433_v44, %v1432_v40  ;;  %v1545_v47 = vpop.f32.mrf.mxu1 }
 0x13d   : > { %v1435_v48 = vpop.f32.mrf.mxu0  ;;  %v1546_v50 = vadd.f32 %v1545_v47, %v1544_v43 }
 0x13e   : > { %1161 = vst [vmem:[%s2066_s26 + $0x80] sm:$0xff] %v1083_v45  ;;  %v925_v49 = vadd.f32 %v1434_v46, %v2061_v34  ;;  %v1547_v51 = vpop.f32.mrf.mxu1 }
 0x13f   : > { %v1436_v52 = vpop.f32.mrf.mxu0 }
 0x140   : > { %v1086_v53 = vadd.f32 %v1546_v50, %v925_v49  ;;  %v1437_v54 = vadd.f32 %v1436_v52, %v1435_v48  ;;  %v1548_v55 = vpop.f32.mrf.mxu1 }
 0x141   : > { %v1438_v56 = vpop.f32.mrf.mxu0  ;;  %v1549_v58 = vadd.f32 %v1548_v55, %v1547_v51 }
 0x142   : > { %1162 = vst [vmem:[%s2066_s26 + $0x88] sm:$0xff] %v1086_v53  ;;  %v930_v57 = vadd.f32 %v1437_v54, %v2061_v34  ;;  %v1550_v59 = vpop.f32.mrf.mxu1 }
 0x143   : > { %v1439_v60 = vpop.f32.mrf.mxu0 }
 0x144   : > { %v1091_v61 = vadd.f32 %v1549_v58, %v930_v57  ;;  %v1440_v62 = vadd.f32 %v1439_v60, %v1438_v56  ;;  %v1551_v63 = vpop.f32.mrf.mxu1 }
 0x145   : > { %v1441_v0 = vpop.f32.mrf.mxu0  ;;  %v1552_v2 = vadd.f32 %v1551_v63, %v1550_v59 }
 0x146   : > { %1163 = vst [vmem:[%s2066_s26 + $0x90] sm:$0xff] %v1091_v61  ;;  %v933_v1 = vadd.f32 %v1440_v62, %v2061_v34  ;;  %v1553_v3 = vpop.f32.mrf.mxu1 }
 0x147   : > { %v1442_v4 = vpop.f32.mrf.mxu0 }
 0x148   : > { %v1094_v5 = vadd.f32 %v1552_v2, %v933_v1  ;;  %v1443_v6 = vadd.f32 %v1442_v4, %v1441_v0  ;;  %v1554_v7 = vpop.f32.mrf.mxu1 }
 0x149   : > { %v1444_v8 = vpop.f32.mrf.mxu0  ;;  %v1555_v10 = vadd.f32 %v1554_v7, %v1553_v3 }
 0x14a   : > { %1164 = vst [vmem:[%s2066_s26 + $0x98] sm:$0xff] %v1094_v5  ;;  %v938_v9 = vadd.f32 %v1443_v6, %v2061_v34  ;;  %v1556_v11 = vpop.f32.mrf.mxu1 }
 0x14b   : > { %v1445_v12 = vpop.f32.mrf.mxu0 }
 0x14c   : > { %v1099_v13 = vadd.f32 %v1555_v10, %v938_v9  ;;  %v1446_v14 = vadd.f32 %v1445_v12, %v1444_v8  ;;  %v1557_v15 = vpop.f32.mrf.mxu1 }
 0x14d   : > { %v1447_v16 = vpop.f32.mrf.mxu0  ;;  %v1558_v18 = vadd.f32 %v1557_v15, %v1556_v11 }
 0x14e   : > { %1165 = vst [vmem:[%s2066_s26 + $0xa0] sm:$0xff] %v1099_v13  ;;  %v941_v17 = vadd.f32 %v1446_v14, %v2061_v34  ;;  %v1559_v19 = vpop.f32.mrf.mxu1 }
 0x14f   : > { %v1448_v20 = vpop.f32.mrf.mxu0 }
 0x150   : > { %v1102_v21 = vadd.f32 %v1558_v18, %v941_v17  ;;  %v1449_v22 = vadd.f32 %v1448_v20, %v1447_v16  ;;  %v1560_v23 = vpop.f32.mrf.mxu1 }
 0x151   : > { %v1450_v24 = vpop.f32.mrf.mxu0  ;;  %v1561_v26 = vadd.f32 %v1560_v23, %v1559_v19 }
 0x152   : > { %1166 = vst [vmem:[%s2066_s26 + $0xa8] sm:$0xff] %v1102_v21  ;;  %v946_v25 = vadd.f32 %v1449_v22, %v2061_v34  ;;  %v1562_v27 = vpop.f32.mrf.mxu1 }
 0x153   : > { %v1451_v28 = vpop.f32.mrf.mxu0 }
 0x154   : > { %v1107_v29 = vadd.f32 %v1561_v26, %v946_v25  ;;  %v1452_v30 = vadd.f32 %v1451_v28, %v1450_v24  ;;  %v1563_v31 = vpop.f32.mrf.mxu1 }
 0x155   : > { %v1453_v32 = vpop.f32.mrf.mxu0  ;;  %v1564_v35 = vadd.f32 %v1563_v31, %v1562_v27 }
 0x156   : > { %1167 = vst [vmem:[%s2066_s26 + $0xb0] sm:$0xff] %v1107_v29  ;;  %v949_v33 = vadd.f32 %v1452_v30, %v2061_v34  ;;  %v1565_v36 = vpop.f32.mrf.mxu1 }
 0x157   : > { %v1454_v37 = vpop.f32.mrf.mxu0 }
 0x158   : > { %v1110_v38 = vadd.f32 %v1564_v35, %v949_v33  ;;  %v1455_v39 = vadd.f32 %v1454_v37, %v1453_v32  ;;  %v1566_v40 = vpop.f32.mrf.mxu1 }
 0x159   : > { %v1456_v41 = vpop.f32.mrf.mxu0  ;;  %v1567_v43 = vadd.f32 %v1566_v40, %v1565_v36 }
 0x15a   : > { %1168 = vst [vmem:[%s2066_s26 + $0xb8] sm:$0xff] %v1110_v38  ;;  %v954_v42 = vadd.f32 %v1455_v39, %v2061_v34  ;;  %v1568_v44 = vpop.f32.mrf.mxu1 }
 0x15b   : > { %v1457_v45 = vpop.f32.mrf.mxu0 }
 0x15c   : > { %v1115_v46 = vadd.f32 %v1567_v43, %v954_v42  ;;  %v1458_v47 = vadd.f32 %v1457_v45, %v1456_v41  ;;  %v1569_v48 = vpop.f32.mrf.mxu1 }
 0x15d   : > { %v1459_v49 = vpop.f32.mrf.mxu0  ;;  %v1570_v51 = vadd.f32 %v1569_v48, %v1568_v44 }
 0x15e   : > { %1169 = vst [vmem:[%s2066_s26 + $0xc0] sm:$0xff] %v1115_v46  ;;  %v957_v50 = vadd.f32 %v1458_v47, %v2061_v34  ;;  %v1571_v52 = vpop.f32.mrf.mxu1 }
 0x15f   : > { %v1460_v53 = vpop.f32.mrf.mxu0 }
 0x160   : > { %v1118_v54 = vadd.f32 %v1570_v51, %v957_v50  ;;  %v1461_v55 = vadd.f32 %v1460_v53, %v1459_v49  ;;  %v1572_v56 = vpop.f32.mrf.mxu1 }
 0x161   : > { %v1462_v57 = vpop.f32.mrf.mxu0  ;;  %v1573_v59 = vadd.f32 %v1572_v56, %v1571_v52 }
 0x162   : > { %1170 = vst [vmem:[%s2066_s26 + $0xc8] sm:$0xff] %v1118_v54  ;;  %v962_v58 = vadd.f32 %v1461_v55, %v2061_v34  ;;  %v1574_v60 = vpop.f32.mrf.mxu1 }
 0x163   : > { %v1463_v61 = vpop.f32.mrf.mxu0 }
 0x164   : > { %v1123_v62 = vadd.f32 %v1573_v59, %v962_v58  ;;  %v1464_v63 = vadd.f32 %v1463_v61, %v1462_v57  ;;  %v1575_v0 = vpop.f32.mrf.mxu1 }
 0x165   : > { %v1465_v1 = vpop.f32.mrf.mxu0  ;;  %v1576_v3 = vadd.f32 %v1575_v0, %v1574_v60 }
 0x166   : > { %1171 = vst [vmem:[%s2066_s26 + $0xd0] sm:$0xff] %v1123_v62  ;;  %v965_v2 = vadd.f32 %v1464_v63, %v2061_v34  ;;  %v1577_v4 = vpop.f32.mrf.mxu1 }
 0x167   : > { %v1466_v5 = vpop.f32.mrf.mxu0 }
 0x168   : > { %v1126_v6 = vadd.f32 %v1576_v3, %v965_v2  ;;  %v1467_v7 = vadd.f32 %v1466_v5, %v1465_v1  ;;  %v1578_v8 = vpop.f32.mrf.mxu1 }
 0x169   : > { %v1468_v9 = vpop.f32.mrf.mxu0  ;;  %v1579_v11 = vadd.f32 %v1578_v8, %v1577_v4 }
 0x16a   : > { %1172 = vst [vmem:[%s2066_s26 + $0xd8] sm:$0xff] %v1126_v6  ;;  %v970_v10 = vadd.f32 %v1467_v7, %v2061_v34  ;;  %v1580_v12 = vpop.f32.mrf.mxu1 }
 0x16b   : > { %v1469_v13 = vpop.f32.mrf.mxu0 }
 0x16c   : > { %v1131_v14 = vadd.f32 %v1579_v11, %v970_v10  ;;  %v1470_v15 = vadd.f32 %v1469_v13, %v1468_v9  ;;  %v1581_v16 = vpop.f32.mrf.mxu1 }
 0x16d   : > { %v1471_v17 = vpop.f32.mrf.mxu0  ;;  %v1582_v19 = vadd.f32 %v1581_v16, %v1580_v12 }
 0x16e   : > { %1173 = vst [vmem:[%s2066_s26 + $0xe0] sm:$0xff] %v1131_v14  ;;  %v973_v18 = vadd.f32 %v1470_v15, %v2061_v34  ;;  %v1583_v20 = vpop.f32.mrf.mxu1 }
 0x16f   : > { %v1472_v21 = vpop.f32.mrf.mxu0 }
 0x170   : > { %v1134_v22 = vadd.f32 %v1582_v19, %v973_v18  ;;  %v1473_v23 = vadd.f32 %v1472_v21, %v1471_v17  ;;  %v1584_v24 = vpop.f32.mrf.mxu1 }
 0x171   : > { %v1474_v25 = vpop.f32.mrf.mxu0  ;;  %v1585_v27 = vadd.f32 %v1584_v24, %v1583_v20 }
 0x172   : > { %1174 = vst [vmem:[%s2066_s26 + $0xe8] sm:$0xff] %v1134_v22  ;;  %v978_v26 = vadd.f32 %v1473_v23, %v2061_v34  ;;  %v1586_v28 = vpop.f32.mrf.mxu1 }
 0x173   : > { %v1475_v29 = vpop.f32.mrf.mxu0 }
 0x174   : > { %v1139_v30 = vadd.f32 %v1585_v27, %v978_v26  ;;  %v1476_v31 = vadd.f32 %v1475_v29, %v1474_v25  ;;  %v1587_v32 = vpop.f32.mrf.mxu1 }
 0x175   : > { %v1588_v35 = vadd.f32 %v1587_v32, %v1586_v28 }
 0x176   : > { %1175 = vst [vmem:[%s2066_s26 + $0xf0] sm:$0xff] %v1139_v30  ;;  %v981_v33 = vadd.f32 %v1476_v31, %v2061_v34 }
 0x178   : > { %v1142_v36 = vadd.f32 %v1588_v35, %v981_v33 }
 0x17a   : > { %1176 = vst [vmem:[%s2066_s26 + $0xf8] sm:$0xff] %v1142_v36 }
 0x17b   : > { %1771 = shalt.err (!%p1768_p3)
}
 0x17c   : > { %s1772_s11 = scalar_lea.hbm %s2135_s4, 4096  ;;  %s1776_s17 = scalar_lea.hbm %s2185_s3, 8192 }
 0x17d   : > { %p1773_p4 = scmp.ne.s32.totalorder %s2135_s4, %s1772_s11  ;;  %p1777_p9 = scmp.lt.s32.totalorder %s2135_s4, %s2185_s3 }
 0x17e   : > { %p1778_p10 = scmp.lt.s32.totalorder %s1776_s17, %s1772_s11 }
 0x17f   : > { %p1774_p7 = pnand %p1773_p4, %p1881_p5 }
 0x180   : > { %p1779_p11 = por %p1778_p10, %p1777_p9 }
 0x181   : > { %p1775_p8 = pneg %p1774_p7 }
 0x183   : > { %p1780_p12 = pnand %p1779_p11, %p1775_p8 }
 0x185   : > { %1783 = shalt.err (!%p1780_p12)
}
 0x186   : > { %s1821_s24 = smov 128   ;;  %s1822_s25 = smov 8  }
 0x187   : > { %1589 = dma.vmem_to_hbm [thread:$0]  (%p1881_p5), %s2137_s28, 4096, %s2135_s4, %s2142_s5, %s1821_s24, %s1821_s24, %s1822_s25  }
 0x188 PF: > { %p1595_p13 = scmp.ge.s32.totalorder %s1818_s15, 2  ;;  %s1206_s26 = sand.u32 1, %s1806_s12  }
 0x189   : > { %s1207_s27 = scalar_lea.sflag [#allocation3], %s1206_s26 }
 0x18a   : > { %p1592_p0 = pnand %p1595_p13, %p1885_p6 }
 0x18c   : > { %p1593_p1 = pneg %p1592_p0 }
 0x18e   : > { %1801 = dma.done.wait (%p1593_p1), %s1207_s27, 4096  }
 0x18f   : > { %1803 = vsyncadd (%p1593_p1), %s1207_s27, 4294963200  ;;  %p13_p2 = scmp.ge.s32.totalorder %s1868_s18, 4   ;;  %s2188_s12 = smov %s1810_s13 }
 0x190   : > { %s2189_s13 = smov %s1814_s14  ;;  %s2190_s14 = smov %s1879_s21 }
 0x191   : > { %s2191_s15 = smov %s1868_s18  ;;  %15 = sbr.rel (!%p13_p2) target bundleno = 3 (0x3), region = 67 }
 0x196   :  { %1212 = vsyncpa [#allocation3], 1 }
 0x197   :  { %1214 = vsyncpa [#allocation3 + $0x1], 1 }

// kernel: gcn_encoder_forward.3
= control target key start
LH: loop header
LB: loop body
LE: loop exit
PB: predicated region body
PF: predicated region fallthrough
CT: control target
= control target key end

     0   :  { %s1054_s9 = smov 0   ;;  %s1138_s0 = inlined_call_operand.vmem [shape: bf16[512,128], index: 0, kind: input, shape index: {}]   ;;  %s1139_s1 = inlined_call_operand.vmem [shape: bf16[128,128], index: 1, kind: input, shape index: {}]   ;;  %s1140_s2 = inlined_call_operand.vmem [shape: bf16[512,128], index: 2, kind: output, shape index: {}]  }
   0x1 LB: > { %s717_s10 = sadd.s32 4294967295, %s1037_s9   ;;  %p721_p0 = scmp.ge.s32.totalorder %s1037_s9, 1  ;;  %s1037_s9 = sphi %s1054_s9, %s12_s9  }
   0x2   : > { %p113_p1 = scmp.lt.s32.totalorder %s1037_s9, 3 }
   0x4   : > { %p114_p2 = pnand %p721_p0, %p113_p1 }
   0x5   : > { %s722_s13 = sshll.u32 (!%p114_p2), %s717_s10, 5 }
   0x6   : > { %117 = sbr.rel (%p114_p2) target bundleno = 270 (0x10e), region = 28  ;;  %p136_p3 = scmp.lt.s32.totalorder (!%p114_p2), %s722_s13, 63 }
   0xb   : > { %v1007_v0 = vld [vmem:[%s1139_s1 + $0x38] sm:$0xff]   ;;  %v1008_v1 = vld [vmem:[%s1139_s1 + $0x30] sm:$0xff]   ;;  %s1142_s13 = smov (!%p136_p3, %s722_s13), 63  ;;  %v1009_v2 = vld [vmem:[%s1139_s1 + $0x28] sm:$0xff]  }
   0xc   : > { %935 = vmatprep.subr.bf16.mxu0 %v1007_v0  ;;  %983 = vmatprep.subr.bf16.mxu1 %v1007_v0  ;;  %s723_s18 = sshll.u32 %s1142_s13, 2  ;;  %v1010_v3 = vld [vmem:[%s1139_s1 + $0x20] sm:$0xff]   ;;  %v1011_v6 = vld [vmem:[%s1139_s1 + $0x18] sm:$0xff]   ;;  %v1012_v7 = vld [vmem:[%s1139_s1 + $0x10] sm:$0xff]  }
   0xd   : > { %936 = vmatpush3.bf16.msra.mxu0 %v1007_v0  ;;  %991 = vmatpush3.bf16.msra.mxu1 %v1007_v0  ;;  %s1079_s21 = scalar_lea.vmem %s1138_s0, %s723_s18  ;;  %v1013_v8 = vld [vmem:[%s1139_s1 + $0x8] sm:$0xff]   ;;  %v1014_v9 = vld [vmem:[%s1139_s1] sm:$0xff]   ;;  %s1117_s6 = scalar_lea.vmem %s1140_s2, %s723_s18 }
   0xe   : > { %937 = vmatprep.subr.bf16.mxu0 %v1008_v1  ;;  %984 = vmatprep.subr.bf16.mxu1 %v1008_v1  ;;  %v1015_v4 = vld [vmem:[%s1079_s21] sm:$0xff]   ;;  %v1017_v10 = vld [vmem:[%s1079_s21 + $0x8] sm:$0xff]   ;;  %v1019_v12 = vld [vmem:[%s1079_s21 + $0x10] sm:$0xff]  }
   0xf   : > { %v1016_v5 = vld [vmem:[%s1079_s21 + $0x40] sm:$0xff]   ;;  %951 = vmatprep.mubr.bf16.mxu0 %v1015_v4  ;;  %v1018_v11 = vld [vmem:[%s1079_s21 + $0x48] sm:$0xff]   ;;  %v1020_v13 = vld [vmem:[%s1079_s21 + $0x50] sm:$0xff]  }
  0x10   : > { %967 = vmatprep.mubr.bf16.mxu1 %v1016_v5  ;;  %v1021_v14 = vld [vmem:[%s1079_s21 + $0x18] sm:$0xff]   ;;  %v1023_v16 = vld [vmem:[%s1079_s21 + $0x20] sm:$0xff]   ;;  %v1025_v18 = vld [vmem:[%s1079_s21 + $0x28] sm:$0xff]  }
  0x11   : > { %938 = vmatpush3.bf16.msra.mxu0 %v1008_v1  ;;  %992 = vmatpush3.bf16.msra.mxu1 %v1008_v1  ;;  %v1022_v15 = vld [vmem:[%s1079_s21 + $0x58] sm:$0xff]   ;;  %v1024_v17 = vld [vmem:[%s1079_s21 + $0x60] sm:$0xff]   ;;  %v1026_v19 = vld [vmem:[%s1079_s21 + $0x68] sm:$0xff]  }
  0x12   : > { %939 = vmatprep.subr.bf16.mxu0 %v1009_v2  ;;  %985 = vmatprep.subr.bf16.mxu1 %v1009_v2  ;;  %v1027_v20 = vld [vmem:[%s1079_s21 + $0x30] sm:$0xff]   ;;  %v1029_v22 = vld [vmem:[%s1079_s21 + $0x38] sm:$0xff]  }
  0x13   : > { %v1028_v21 = vld [vmem:[%s1079_s21 + $0x70] sm:$0xff]   ;;  %v1030_v23 = vld [vmem:[%s1079_s21 + $0x78] sm:$0xff]  }
  0x15   : > { %940 = vmatpush3.bf16.msra.mxu0 %v1009_v2  ;;  %993 = vmatpush3.bf16.msra.mxu1 %v1009_v2 }
  0x16   : > { %941 = vmatprep.subr.bf16.mxu0 %v1010_v3  ;;  %986 = vmatprep.subr.bf16.mxu1 %v1010_v3 }
  0x19   : > { %942 = vmatpush3.bf16.msra.mxu0 %v1010_v3  ;;  %994 = vmatpush3.bf16.msra.mxu1 %v1010_v3 }
  0x1a   : > { %943 = vmatprep.subr.bf16.mxu0 %v1011_v6  ;;  %987 = vmatprep.subr.bf16.mxu1 %v1011_v6 }
  0x1d   : > { %944 = vmatpush3.bf16.msra.mxu0 %v1011_v6  ;;  %995 = vmatpush3.bf16.msra.mxu1 %v1011_v6 }
  0x1e   : > { %945 = vmatprep.subr.bf16.mxu0 %v1012_v7  ;;  %988 = vmatprep.subr.bf16.mxu1 %v1012_v7 }
  0x21   : > { %946 = vmatpush3.bf16.msra.mxu0 %v1012_v7  ;;  %996 = vmatpush3.bf16.msra.mxu1 %v1012_v7 }
  0x22   : > { %947 = vmatprep.subr.bf16.mxu0 %v1013_v8  ;;  %989 = vmatprep.subr.bf16.mxu1 %v1013_v8 }
  0x25   : > { %948 = vmatpush3.bf16.msra.mxu0 %v1013_v8  ;;  %997 = vmatpush3.bf16.msra.mxu1 %v1013_v8 }
  0x26   : > { %949 = vmatprep.subr.bf16.mxu0 %v1014_v9  ;;  %990 = vmatprep.subr.bf16.mxu1 %v1014_v9 }
  0x29   : > { %950 = vmatpush3.bf16.msra.mxu0 %v1014_v9  ;;  %998 = vmatpush3.bf16.msra.mxu1 %v1014_v9 }
  0x2c   : > { %952 = vmatmul.mubr.bf16.vlgmr.msra.gmra.mxu0 %v1017_v10  ;;  %968 = vmatmul.mubr.bf16.vlgmr.msra.gmra.mxu1 %v1018_v11 }
  0x2d   : > { %955 = vmatprep.mubr.bf16.mxu0 %v1019_v12  ;;  %971 = vmatprep.mubr.bf16.mxu1 %v1020_v13 }
  0x34   : > { %956 = vmatmul.mubr.bf16.gmra.mxu0 %v1021_v14  ;;  %972 = vmatmul.mubr.bf16.gmra.mxu1 %v1022_v15 }
  0x35   : > { %959 = vmatprep.mubr.bf16.mxu0 %v1023_v16  ;;  %975 = vmatprep.mubr.bf16.mxu1 %v1024_v17 }
  0x3c   : > { %960 = vmatmul.mubr.bf16.gmra.mxu0 %v1025_v18  ;;  %976 = vmatmul.mubr.bf16.gmra.mxu1 %v1026_v19 }
  0x3d   : > { %963 = vmatprep.mubr.bf16.mxu0 %v1027_v20  ;;  %979 = vmatprep.mubr.bf16.mxu1 %v1028_v21 }
  0x44   : > { %964 = vmatmul.mubr.bf16.gmra.mxu0 %v1029_v22  ;;  %980 = vmatmul.mubr.bf16.gmra.mxu1 %v1030_v23 }
  0xec   : > { %v953_v24 = vpop.f32.mrf.mxu0  ;;  %v969_v25 = vpop.f32.mrf.mxu1 }
  0xee   : > { %v374_v26 = vpop.f32.mrf.mxu0  ;;  %v438_v27 = vpop.f32.mrf.mxu1 }
  0xf0   : > { %v954_v28 = vpop.f32.mrf.mxu0  ;;  %v970_v29 = vpop.f32.mrf.mxu1 }
  0xf1   : > { %v824_v30 = vpack.c.bf16 %v954_v28, %v953_v24  ;;  %v864_v31 = vpack.c.bf16 %v970_v29, %v969_v25 }
  0xf2   : > { %v377_v32 = vpop.f32.mrf.mxu0  ;;  %v441_v33 = vpop.f32.mrf.mxu1 }
  0xf3   : > { %896 = vst [vmem:[%s1117_s6 + $0x8] sm:$0xff] %v824_v30   ;;  %904 = vst [vmem:[%s1117_s6 + $0x48] sm:$0xff] %v864_v31   ;;  %v819_v34 = vpack.c.bf16 %v377_v32, %v374_v26  ;;  %v859_v35 = vpack.c.bf16 %v441_v33, %v438_v27 }
  0xf4   : > { %v957_v36 = vpop.f32.mrf.mxu0  ;;  %v973_v37 = vpop.f32.mrf.mxu1 }
  0xf5   : > { %820 = vst [vmem:[%s1117_s6] sm:$0xff] %v819_v34   ;;  %903 = vst [vmem:[%s1117_s6 + $0x40] sm:$0xff] %v859_v35  }
  0xf6   : > { %v390_v38 = vpop.f32.mrf.mxu0  ;;  %v454_v39 = vpop.f32.mrf.mxu1 }
  0xf8   : > { %v958_v40 = vpop.f32.mrf.mxu0  ;;  %v974_v41 = vpop.f32.mrf.mxu1 }
  0xf9   : > { %v834_v42 = vpack.c.bf16 %v958_v40, %v957_v36  ;;  %v874_v43 = vpack.c.bf16 %v974_v41, %v973_v37 }
  0xfa   : > { %v393_v44 = vpop.f32.mrf.mxu0  ;;  %v457_v45 = vpop.f32.mrf.mxu1 }
  0xfb   : > { %898 = vst [vmem:[%s1117_s6 + $0x18] sm:$0xff] %v834_v42   ;;  %906 = vst [vmem:[%s1117_s6 + $0x58] sm:$0xff] %v874_v43   ;;  %v829_v46 = vpack.c.bf16 %v393_v44, %v390_v38  ;;  %v869_v47 = vpack.c.bf16 %v457_v45, %v454_v39 }
  0xfc   : > { %v961_v48 = vpop.f32.mrf.mxu0  ;;  %v977_v49 = vpop.f32.mrf.mxu1 }
  0xfd   : > { %897 = vst [vmem:[%s1117_s6 + $0x10] sm:$0xff] %v829_v46   ;;  %905 = vst [vmem:[%s1117_s6 + $0x50] sm:$0xff] %v869_v47  }
  0xfe   : > { %v406_v50 = vpop.f32.mrf.mxu0  ;;  %v470_v51 = vpop.f32.mrf.mxu1 }
 0x100   : > { %v962_v52 = vpop.f32.mrf.mxu0  ;;  %v978_v53 = vpop.f32.mrf.mxu1 }
 0x101   : > { %v844_v54 = vpack.c.bf16 %v962_v52, %v961_v48  ;;  %v884_v55 = vpack.c.bf16 %v978_v53, %v977_v49 }
 0x102   : > { %v409_v56 = vpop.f32.mrf.mxu0  ;;  %v473_v57 = vpop.f32.mrf.mxu1 }
 0x103   : > { %900 = vst [vmem:[%s1117_s6 + $0x28] sm:$0xff] %v844_v54   ;;  %908 = vst [vmem:[%s1117_s6 + $0x68] sm:$0xff] %v884_v55   ;;  %v839_v58 = vpack.c.bf16 %v409_v56, %v406_v50  ;;  %v879_v59 = vpack.c.bf16 %v473_v57, %v470_v51 }
 0x104   : > { %v965_v60 = vpop.f32.mrf.mxu0  ;;  %v981_v61 = vpop.f32.mrf.mxu1 }
 0x105   : > { %899 = vst [vmem:[%s1117_s6 + $0x20] sm:$0xff] %v839_v58   ;;  %907 = vst [vmem:[%s1117_s6 + $0x60] sm:$0xff] %v879_v59  }
 0x106   : > { %v422_v62 = vpop.f32.mrf.mxu0  ;;  %v486_v63 = vpop.f32.mrf.mxu1 }
 0x108   : > { %v966_v0 = vpop.f32.mrf.mxu0  ;;  %v982_v1 = vpop.f32.mrf.mxu1 }
 0x109   : > { %v854_v2 = vpack.c.bf16 %v966_v0, %v965_v60  ;;  %v894_v3 = vpack.c.bf16 %v982_v1, %v981_v61 }
 0x10a   : > { %v425_v4 = vpop.f32.mrf.mxu0  ;;  %v489_v5 = vpop.f32.mrf.mxu1 }
 0x10b   : > { %902 = vst [vmem:[%s1117_s6 + $0x38] sm:$0xff] %v854_v2   ;;  %910 = vst [vmem:[%s1117_s6 + $0x78] sm:$0xff] %v894_v3   ;;  %v849_v6 = vpack.c.bf16 %v425_v4, %v422_v62  ;;  %v889_v7 = vpack.c.bf16 %v489_v5, %v486_v63 }
 0x10d   : > { %901 = vst [vmem:[%s1117_s6 + $0x30] sm:$0xff] %v849_v6   ;;  %909 = vst [vmem:[%s1117_s6 + $0x70] sm:$0xff] %v889_v7  }
 0x10e PF: > { %s12_s9 = sadd.s32 1, %s1037_s9  }
 0x10f   : > { %p9_p4 = scmp.ge.s32.totalorder %s12_s9, 4  }
 0x111   :  { %11 = sbr.rel (!%p9_p4) target bundleno = 1 (0x1), region = 58 }

// kernel: gcn_encoder_forward.4
= control target key start
LH: loop header
LB: loop body
LE: loop exit
PB: predicated region body
PF: predicated region fallthrough
CT: control target
= control target key end

     0   :  { %s2429_s15 = smov 0   ;;  %s2727_s0 = inlined_call_operand.vmem [shape: bf16[512,512], index: 0, kind: input, shape index: {}]   ;;  %s2728_s1 = inlined_call_operand.vmem [shape: bf16[512,128], index: 1, kind: input, shape index: {}]   ;;  %s2729_s2 = inlined_call_operand.vmem [shape: f32[1,128], index: 2, kind: input, shape index: {}]   ;;  %s2730_s3 = inlined_call_operand.vmem [shape: bf16[128,128], index: 3, kind: input, shape index: {}]   ;;  %s2731_s4 = inlined_call_operand.vmem [shape: bf16[512,128], index: 4, kind: output, shape index: {}]  }
   0x1 LB: > { %s1663_s16 = sadd.s32 4294967295, %s2402_s15   ;;  %p1667_p0 = scmp.ge.s32.totalorder %s2402_s15, 1  ;;  %s2402_s15 = sphi %s2429_s15, %s14_s15  }
   0x2   : > { %p164_p1 = scmp.lt.s32.totalorder %s2402_s15, 3 }
   0x4   : > { %p165_p2 = pnand %p1667_p0, %p164_p1 }
   0x5   : > { %s1668_s19 = sshll.u32 (!%p165_p2), %s1663_s16, 5 }
   0x6   : > { %168 = sbr.rel (%p165_p2) target bundleno = 605 (0x25d), region = 36  ;;  %p192_p3 = scmp.lt.s32.totalorder (!%p165_p2), %s1668_s19, 63 }
   0xb   : > { %v2260_v0 = vld [vmem:[%s2728_s1 + $0x78] sm:$0xff]   ;;  %v2262_v2 = vld [vmem:[%s2728_s1 + $0x70] sm:$0xff]   ;;  %v2264_v4 = vld [vmem:[%s2728_s1 + $0x68] sm:$0xff]   ;;  %s2733_s19 = smov (!%p192_p3, %s1668_s19), 63 }
   0xc   : > { %v2261_v1 = vld [vmem:[%s2728_s1 + $0x38] sm:$0xff]   ;;  %2236 = vmatprep.subr.bf16.mxu1 %v2260_v0  ;;  %1940 = vmatprep.subr.bf16.mxu0 %v2260_v0  ;;  %v2263_v3 = vld [vmem:[%s2728_s1 + $0x30] sm:$0xff]   ;;  %v2265_v5 = vld [vmem:[%s2728_s1 + $0x28] sm:$0xff]   ;;  %s1812_s8 = sshll.u32 %s2733_s19, 4  ;;  %s1672_s7 = sshll.u32 %s2733_s19, 2 }
   0xd   : > { %2244 = vmatpush3.bf16.msra.mxu1 %v2261_v1  ;;  %1941 = vmatpush3.bf16.msra.mxu0 %v2261_v1  ;;  %v2266_v6 = vld [vmem:[%s2728_s1 + $0x60] sm:$0xff]   ;;  %v2268_v8 = vld [vmem:[%s2728_s1 + $0x58] sm:$0xff]   ;;  %s2470_s13 = scalar_lea.vmem %s2727_s0, %s1812_s8  ;;  %v2270_v10 = vld [vmem:[%s2728_s1 + $0x50] sm:$0xff]   ;;  %s2706_s10 = scalar_lea.vmem %s2731_s4, %s1672_s7 }
   0xe   : > { %2237 = vmatprep.subr.bf16.mxu1 %v2262_v2  ;;  %1942 = vmatprep.subr.bf16.mxu0 %v2262_v2  ;;  %v2267_v7 = vld [vmem:[%s2728_s1 + $0x20] sm:$0xff]   ;;  %v2269_v9 = vld [vmem:[%s2728_s1 + $0x18] sm:$0xff]   ;;  %v2271_v12 = vld [vmem:[%s2728_s1 + $0x10] sm:$0xff]  }
   0xf   : > { %v2278_v11 = vld [vmem:[%s2470_s13 + $0x184] ss:$16 sps:$4 sm:$0xff]   ;;  %v2272_v13 = vld [vmem:[%s2728_s1 + $0x48] sm:$0xff]   ;;  %v2279_v17 = vld [vmem:[%s2728_s1 + $0xf8] sm:$0xff]  }
  0x10   : > { %980 = vmatprep.mubr.bf16.mxu1 %v2278_v11  ;;  %v2273_v14 = vld [vmem:[%s2728_s1 + $0x8] sm:$0xff]   ;;  %v2274_v15 = vld [vmem:[%s2728_s1 + $0x40] sm:$0xff]   ;;  %v2280_v19 = vld [vmem:[%s2728_s1 + $0xb8] sm:$0xff]  }
  0x11   : > { %2245 = vmatpush3.bf16.msra.mxu1 %v2263_v3  ;;  %1943 = vmatpush3.bf16.msra.mxu0 %v2263_v3  ;;  %v2275_v16 = vld [vmem:[%s2728_s1] sm:$0xff]   ;;  %v2281_v21 = vld [vmem:[%s2728_s1 + $0xf0] sm:$0xff]   ;;  %v2286_v24 = vld [vmem:[%s2728_s1 + $0xe8] sm:$0xff]  }
  0x12   : > { %2238 = vmatprep.subr.bf16.mxu1 %v2264_v4  ;;  %1944 = vmatprep.subr.bf16.mxu0 %v2264_v4  ;;  %v2276_v18 = vld [vmem:[%s2470_s13 + $0x180] ss:$16 sps:$4 sm:$0xff]   ;;  %v2283_v20 = vld [vmem:[%s2470_s13 + $0x1a4] ss:$16 sps:$4 sm:$0xff]   ;;  %v2287_v27 = vld [vmem:[%s2728_s1 + $0xa8] sm:$0xff]  }
  0x13   : > { %v2282_v22 = vld [vmem:[%s2728_s1 + $0xb0] sm:$0xff]   ;;  %v2288_v28 = vld [vmem:[%s2728_s1 + $0xe0] sm:$0xff]   ;;  %v2293_v32 = vld [vmem:[%s2728_s1 + $0xd8] sm:$0xff]  }
  0x14   : > { %v2285_v23 = vld [vmem:[%s2470_s13 + $0x1a0] ss:$16 sps:$4 sm:$0xff]   ;;  %v2305_v26 = vld [vmem:[%s2470_s13 + $0x4] ss:$16 sps:$4 sm:$0xff]   ;;  %v2294_v36 = vld [vmem:[%s2728_s1 + $0x98] sm:$0xff]  }
  0x15   : > { %2246 = vmatpush3.bf16.msra.mxu1 %v2265_v5  ;;  %1945 = vmatpush3.bf16.msra.mxu0 %v2265_v5  ;;  %v2303_v25 = vld [vmem:[%s2470_s13] ss:$16 sps:$4 sm:$0xff]   ;;  %v2290_v29 = vld [vmem:[%s2470_s13 + $0x1c4] ss:$16 sps:$4 sm:$0xff]   ;;  %v2300_v40 = vld [vmem:[%s2728_s1 + $0xc8] sm:$0xff]  }
  0x16   : > { %2239 = vmatprep.subr.bf16.mxu1 %v2266_v6  ;;  %1946 = vmatprep.subr.bf16.mxu0 %v2266_v6  ;;  %v2310_v30 = vld [vmem:[%s2470_s13 + $0x24] ss:$16 sps:$4 sm:$0xff]   ;;  %v2312_v33 = vld [vmem:[%s2470_s13 + $0x20] ss:$16 sps:$4 sm:$0xff]   ;;  %v2301_v44 = vld [vmem:[%s2728_s1 + $0x88] sm:$0xff]  }
  0x17   : > { %884 = vmatprep.mubr.bf16.mxu0 %v2305_v26  ;;  %v2289_v31 = vld [vmem:[%s2728_s1 + $0xa0] sm:$0xff]   ;;  %v2295_v38 = vld [vmem:[%s2728_s1 + $0xd0] sm:$0xff]   ;;  %v2309_v45 = vld [vmem:[%s2470_s13 + $0xc] ss:$16 sps:$4 sm:$0xff]  }
  0x18   : > { %v2316_v34 = vld [vmem:[%s2470_s13 + $0x44] ss:$16 sps:$4 sm:$0xff]   ;;  %v2292_v35 = vld [vmem:[%s2470_s13 + $0x1c0] ss:$16 sps:$4 sm:$0xff]   ;;  %v2307_v50 = vld [vmem:[%s2470_s13 + $0x8] ss:$16 sps:$4 sm:$0xff]  }
  0x19   : > { %2247 = vmatpush3.bf16.msra.mxu1 %v2267_v7  ;;  %1947 = vmatpush3.bf16.msra.mxu0 %v2267_v7  ;;  %v2297_v37 = vld [vmem:[%s2470_s13 + $0x1e4] ss:$16 sps:$4 sm:$0xff]   ;;  %v2318_v41 = vld [vmem:[%s2470_s13 + $0x40] ss:$16 sps:$4 sm:$0xff]   ;;  %v2313_v51 = vld [vmem:[%s2470_s13 + $0x2c] ss:$16 sps:$4 sm:$0xff]  }
  0x1a   : > { %2240 = vmatprep.subr.bf16.mxu1 %v2268_v8  ;;  %1948 = vmatprep.subr.bf16.mxu0 %v2268_v8  ;;  %v2296_v39 = vld [vmem:[%s2728_s1 + $0x90] sm:$0xff]   ;;  %v2302_v46 = vld [vmem:[%s2728_s1 + $0xc0] sm:$0xff]   ;;  %v2315_v54 = vld [vmem:[%s2470_s13 + $0x28] ss:$16 sps:$4 sm:$0xff]  }
  0x1b   : > { %v2322_v42 = vld [vmem:[%s2470_s13 + $0x64] ss:$16 sps:$4 sm:$0xff]   ;;  %v2299_v43 = vld [vmem:[%s2470_s13 + $0x1e0] ss:$16 sps:$4 sm:$0xff]   ;;  %v2319_v55 = vld [vmem:[%s2470_s13 + $0x4c] ss:$16 sps:$4 sm:$0xff]  }
  0x1c   : > { %v2306_v47 = vld [vmem:[%s2728_s1 + $0x80] sm:$0xff]   ;;  %v2321_v58 = vld [vmem:[%s2470_s13 + $0x48] ss:$16 sps:$4 sm:$0xff]   ;;  %v2325_v59 = vld [vmem:[%s2470_s13 + $0x6c] ss:$16 sps:$4 sm:$0xff]  }
  0x1d   : > { %2248 = vmatpush3.bf16.msra.mxu1 %v2269_v9  ;;  %1949 = vmatpush3.bf16.msra.mxu0 %v2269_v9  ;;  %v2324_v48 = vld [vmem:[%s2470_s13 + $0x60] ss:$16 sps:$4 sm:$0xff]   ;;  %v2328_v49 = vld [vmem:[%s2470_s13 + $0x84] ss:$16 sps:$4 sm:$0xff]   ;;  %v2327_v62 = vld [vmem:[%s2470_s13 + $0x68] ss:$16 sps:$4 sm:$0xff]  }
  0x1e   : > { %2241 = vmatprep.subr.bf16.mxu1 %v2270_v10  ;;  %1950 = vmatprep.subr.bf16.mxu0 %v2270_v10  ;;  %v2330_v52 = vld [vmem:[%s2470_s13 + $0x80] ss:$16 sps:$4 sm:$0xff]   ;;  %v2334_v53 = vld [vmem:[%s2470_s13 + $0xa4] ss:$16 sps:$4 sm:$0xff]   ;;  %v2331_v63 = vld [vmem:[%s2470_s13 + $0x8c] ss:$16 sps:$4 sm:$0xff]  }
  0x1f   : > { %v2336_v56 = vld [vmem:[%s2470_s13 + $0xa0] ss:$16 sps:$4 sm:$0xff]   ;;  %v2340_v57 = vld [vmem:[%s2470_s13 + $0xc4] ss:$16 sps:$4 sm:$0xff]   ;;  %v2333_v2 = vld [vmem:[%s2470_s13 + $0x88] ss:$16 sps:$4 sm:$0xff]  }
  0x20   : > { %v2342_v60 = vld [vmem:[%s2470_s13 + $0xc0] ss:$16 sps:$4 sm:$0xff]   ;;  %v2346_v61 = vld [vmem:[%s2470_s13 + $0xe4] ss:$16 sps:$4 sm:$0xff]   ;;  %v2337_v3 = vld [vmem:[%s2470_s13 + $0xac] ss:$16 sps:$4 sm:$0xff]  }
  0x21   : > { %2249 = vmatpush3.bf16.msra.mxu1 %v2271_v12  ;;  %1951 = vmatpush3.bf16.msra.mxu0 %v2271_v12  ;;  %v2348_v0 = vld [vmem:[%s2470_s13 + $0xe0] ss:$16 sps:$4 sm:$0xff]   ;;  %v2352_v1 = vld [vmem:[%s2470_s13 + $0x104] ss:$16 sps:$4 sm:$0xff]   ;;  %v2339_v6 = vld [vmem:[%s2470_s13 + $0xa8] ss:$16 sps:$4 sm:$0xff]  }
  0x22   : > { %2242 = vmatprep.subr.bf16.mxu1 %v2272_v13  ;;  %1952 = vmatprep.subr.bf16.mxu0 %v2272_v13  ;;  %v2354_v4 = vld [vmem:[%s2470_s13 + $0x100] ss:$16 sps:$4 sm:$0xff]   ;;  %v2358_v5 = vld [vmem:[%s2470_s13 + $0x124] ss:$16 sps:$4 sm:$0xff]   ;;  %v2343_v7 = vld [vmem:[%s2470_s13 + $0xcc] ss:$16 sps:$4 sm:$0xff]  }
  0x23   : > { %v2360_v8 = vld [vmem:[%s2470_s13 + $0x120] ss:$16 sps:$4 sm:$0xff]   ;;  %v2364_v9 = vld [vmem:[%s2470_s13 + $0x144] ss:$16 sps:$4 sm:$0xff]   ;;  %v2345_v10 = vld [vmem:[%s2470_s13 + $0xc8] ss:$16 sps:$4 sm:$0xff]  }
  0x24   : > { %v2349_v11 = vld [vmem:[%s2470_s13 + $0xec] ss:$16 sps:$4 sm:$0xff]   ;;  %v2366_v13 = vld [vmem:[%s2470_s13 + $0x140] ss:$16 sps:$4 sm:$0xff]  }
  0x25   : > { %2250 = vmatpush3.bf16.msra.mxu1 %v2273_v14  ;;  %1953 = vmatpush3.bf16.msra.mxu0 %v2273_v14  ;;  %v2388_v12 = vld [vmem:[%s2730_s3 + $0x38] sm:$0xff]   ;;  %v2370_v14 = vld [vmem:[%s2470_s13 + $0x164] ss:$16 sps:$4 sm:$0xff]  }
  0x26   : > { %2243 = vmatprep.subr.bf16.mxu1 %v2274_v15  ;;  %1954 = vmatprep.subr.bf16.mxu0 %v2274_v15  ;;  %v2351_v15 = vld [vmem:[%s2470_s13 + $0xe8] ss:$16 sps:$4 sm:$0xff]   ;;  %v2393_v26 = vld [vmem:[%s2730_s3 + $0x10] sm:$0xff]  }
  0x29   : > { %2251 = vmatpush3.bf16.msra.mxu1 %v2275_v16  ;;  %1955 = vmatpush3.bf16.msra.mxu0 %v2275_v16  ;;  %v2355_v16 = vld [vmem:[%s2470_s13 + $0x10c] ss:$16 sps:$4 sm:$0xff]  }
  0x2a   : > { %2052 = vmatprep.subr.bf16.mxu1 %v2279_v17  ;;  %2188 = vmatprep.subr.bf16.mxu0 %v2388_v12  ;;  %v2389_v17 = vld [vmem:[%s2730_s3 + $0x30] sm:$0xff]  }
  0x2c   : > { %981 = vmatmul.mubr.bf16.vlgmr.msra.gmra.mxu1 %v2276_v18  ;;  %885 = vmatmul.mubr.bf16.vlgmr.msra.gmra.mxu0 %v2303_v25  ;;  %v2372_v18 = vld [vmem:[%s2470_s13 + $0x160] ss:$16 sps:$4 sm:$0xff]   ;;  %v2392_v25 = vld [vmem:[%s2730_s3 + $0x18] sm:$0xff]  }
  0x2d   : > { %2053 = vmatpush3.bf16.msra.mxu1 %v2280_v19  ;;  %988 = vmatprep.mubr.bf16.mxu1 %v2283_v20  ;;  %v2357_v19 = vld [vmem:[%s2470_s13 + $0x108] ss:$16 sps:$4 sm:$0xff]   ;;  %v2361_v20 = vld [vmem:[%s2470_s13 + $0x12c] ss:$16 sps:$4 sm:$0xff]  }
  0x2e   : > { %2054 = vmatprep.subr.bf16.mxu1 %v2281_v21  ;;  %892 = vmatprep.mubr.bf16.mxu0 %v2310_v30  ;;  %v2390_v21 = vld [vmem:[%s2730_s3 + $0x28] sm:$0xff]   ;;  %v2395_v30 = vld [vmem:[%s2730_s3] sm:$0xff]  }
  0x2f   : > { %2189 = vmatpush3.bf16.msra.mxu0 %v2388_v12 }
  0x30   : > { %2190 = vmatprep.subr.bf16.mxu0 %v2389_v17 }
  0x31   : > { %2055 = vmatpush3.bf16.msra.mxu1 %v2282_v22  ;;  %v2391_v22 = vld [vmem:[%s2730_s3 + $0x20] sm:$0xff]  }
  0x32   : > { %2056 = vmatprep.subr.bf16.mxu1 %v2286_v24  ;;  %v2367_v24 = vld [vmem:[%s2470_s13 + $0x14c] ss:$16 sps:$4 sm:$0xff]  }
  0x33   : > { %2191 = vmatpush3.bf16.msra.mxu0 %v2389_v17  ;;  %v2648_v17 = vld [vmem:[%s2729_s2] ss:$0 sm:$0xff] }
  0x34   : > { %989 = vmatmul.mubr.bf16.gmra.mxu1 %v2285_v23  ;;  %893 = vmatmul.mubr.bf16.gmra.mxu0 %v2312_v33  ;;  %v2363_v23 = vld [vmem:[%s2470_s13 + $0x128] ss:$16 sps:$4 sm:$0xff]  }
  0x35   : > { %2057 = vmatpush3.bf16.msra.mxu1 %v2287_v27  ;;  %996 = vmatprep.mubr.bf16.mxu1 %v2290_v29  ;;  %v2369_v27 = vld [vmem:[%s2470_s13 + $0x148] ss:$16 sps:$4 sm:$0xff]  }
  0x36   : > { %2058 = vmatprep.subr.bf16.mxu1 %v2288_v28  ;;  %900 = vmatprep.mubr.bf16.mxu0 %v2316_v34  ;;  %v2373_v28 = vld [vmem:[%s2470_s13 + $0x16c] ss:$16 sps:$4 sm:$0xff]   ;;  %v2378_v33 = vld [vmem:[%s2470_s13 + $0x188] ss:$16 sps:$4 sm:$0xff]  }
  0x37   : > { %2192 = vmatprep.subr.bf16.mxu0 %v2390_v21  ;;  %v2394_v29 = vld [vmem:[%s2730_s3 + $0x8] sm:$0xff]  }
  0x38   : > { %2193 = vmatpush3.bf16.msra.mxu0 %v2390_v21  ;;  %v2379_v34 = vld [vmem:[%s2470_s13 + $0x1ac] ss:$16 sps:$4 sm:$0xff]  }
  0x39   : > { %2059 = vmatpush3.bf16.msra.mxu1 %v2289_v31  ;;  %2194 = vmatprep.subr.bf16.mxu0 %v2391_v22  ;;  %v2375_v31 = vld [vmem:[%s2470_s13 + $0x168] ss:$16 sps:$4 sm:$0xff]  }
  0x3a   : > { %2060 = vmatprep.subr.bf16.mxu1 %v2293_v32  ;;  %v2376_v32 = vld [vmem:[%s2470_s13 + $0x18c] ss:$16 sps:$4 sm:$0xff]  }
  0x3c   : > { %997 = vmatmul.mubr.bf16.gmra.mxu1 %v2292_v35  ;;  %901 = vmatmul.mubr.bf16.gmra.mxu0 %v2318_v41  ;;  %v2381_v35 = vld [vmem:[%s2470_s13 + $0x1a8] ss:$16 sps:$4 sm:$0xff]  }
  0x3d   : > { %2061 = vmatpush3.bf16.msra.mxu1 %v2294_v36  ;;  %1004 = vmatprep.mubr.bf16.mxu1 %v2297_v37  ;;  %v2382_v36 = vld [vmem:[%s2470_s13 + $0x1cc] ss:$16 sps:$4 sm:$0xff]   ;;  %v2384_v37 = vld [vmem:[%s2470_s13 + $0x1c8] ss:$16 sps:$4 sm:$0xff]  }
  0x3e   : > { %2062 = vmatprep.subr.bf16.mxu1 %v2295_v38  ;;  %908 = vmatprep.mubr.bf16.mxu0 %v2322_v42  ;;  %v2385_v38 = vld [vmem:[%s2470_s13 + $0x1ec] ss:$16 sps:$4 sm:$0xff]  }
  0x3f   : > { %2195 = vmatpush3.bf16.msra.mxu0 %v2391_v22 }
  0x40   : > { %2196 = vmatprep.subr.bf16.mxu0 %v2392_v25 }
  0x41   : > { %2063 = vmatpush3.bf16.msra.mxu1 %v2296_v39  ;;  %v2387_v39 = vld [vmem:[%s2470_s13 + $0x1e8] ss:$16 sps:$4 sm:$0xff]  }
  0x42   : > { %2064 = vmatprep.subr.bf16.mxu1 %v2300_v40 }
  0x43   : > { %2197 = vmatpush3.bf16.msra.mxu0 %v2392_v25 }
  0x44   : > { %1005 = vmatmul.mubr.bf16.gmra.mxu1 %v2299_v43  ;;  %909 = vmatmul.mubr.bf16.gmra.mxu0 %v2324_v48 }
  0x45   : > { %2065 = vmatpush3.bf16.msra.mxu1 %v2301_v44  ;;  %1045 = vmatprep.mubr.bf16.mxu1 %v2309_v45 }
  0x46   : > { %2066 = vmatprep.subr.bf16.mxu1 %v2302_v46  ;;  %916 = vmatprep.mubr.bf16.mxu0 %v2328_v49 }
  0x47   : > { %2198 = vmatprep.subr.bf16.mxu0 %v2393_v26 }
  0x48   : > { %2199 = vmatpush3.bf16.msra.mxu0 %v2393_v26 }
  0x49   : > { %2067 = vmatpush3.bf16.msra.mxu1 %v2306_v47  ;;  %2200 = vmatprep.subr.bf16.mxu0 %v2394_v29 }
  0x4c   : > { %1046 = vmatmul.mubr.bf16.vlgmr.msra.gmra.mxu1 %v2307_v50  ;;  %917 = vmatmul.mubr.bf16.gmra.mxu0 %v2330_v52 }
  0x4d   : > { %1053 = vmatprep.mubr.bf16.mxu1 %v2313_v51  ;;  %924 = vmatprep.mubr.bf16.mxu0 %v2334_v53 }
  0x4e   : > { %2201 = vmatpush3.bf16.msra.mxu0 %v2394_v29 }
  0x4f   : > { %2202 = vmatprep.subr.bf16.mxu0 %v2395_v30 }
  0x52   : > { %2203 = vmatpush3.bf16.msra.mxu0 %v2395_v30 }
  0x54   : > { %1054 = vmatmul.mubr.bf16.gmra.mxu1 %v2315_v54  ;;  %925 = vmatmul.mubr.bf16.gmra.mxu0 %v2336_v56 }
  0x55   : > { %1061 = vmatprep.mubr.bf16.mxu1 %v2319_v55  ;;  %932 = vmatprep.mubr.bf16.mxu0 %v2340_v57 }
  0x5c   : > { %1062 = vmatmul.mubr.bf16.gmra.mxu1 %v2321_v58  ;;  %933 = vmatmul.mubr.bf16.gmra.mxu0 %v2342_v60 }
  0x5d   : > { %1069 = vmatprep.mubr.bf16.mxu1 %v2325_v59  ;;  %940 = vmatprep.mubr.bf16.mxu0 %v2346_v61 }
  0x64   : > { %1070 = vmatmul.mubr.bf16.gmra.mxu1 %v2327_v62  ;;  %941 = vmatmul.mubr.bf16.gmra.mxu0 %v2348_v0 }
  0x65   : > { %1077 = vmatprep.mubr.bf16.mxu1 %v2331_v63  ;;  %948 = vmatprep.mubr.bf16.mxu0 %v2352_v1 }
  0x6c   : > { %1078 = vmatmul.mubr.bf16.gmra.mxu1 %v2333_v2  ;;  %949 = vmatmul.mubr.bf16.gmra.mxu0 %v2354_v4 }
  0x6d   : > { %1085 = vmatprep.mubr.bf16.mxu1 %v2337_v3  ;;  %956 = vmatprep.mubr.bf16.mxu0 %v2358_v5 }
  0x74   : > { %1086 = vmatmul.mubr.bf16.gmra.mxu1 %v2339_v6  ;;  %957 = vmatmul.mubr.bf16.gmra.mxu0 %v2360_v8 }
  0x75   : > { %1093 = vmatprep.mubr.bf16.mxu1 %v2343_v7  ;;  %964 = vmatprep.mubr.bf16.mxu0 %v2364_v9 }
  0x7c   : > { %1094 = vmatmul.mubr.bf16.gmra.mxu1 %v2345_v10  ;;  %965 = vmatmul.mubr.bf16.gmra.mxu0 %v2366_v13 }
  0x7d   : > { %1101 = vmatprep.mubr.bf16.mxu1 %v2349_v11  ;;  %972 = vmatprep.mubr.bf16.mxu0 %v2370_v14 }
  0x84   : > { %1102 = vmatmul.mubr.bf16.gmra.mxu1 %v2351_v15  ;;  %973 = vmatmul.mubr.bf16.gmra.mxu0 %v2372_v18 }
  0x85   : > { %1109 = vmatprep.mubr.bf16.mxu1 %v2355_v16 }
  0x8c   : > { %1110 = vmatmul.mubr.bf16.gmra.mxu1 %v2357_v19 }
  0x8d   : > { %1117 = vmatprep.mubr.bf16.mxu1 %v2361_v20 }
  0x94   : > { %1118 = vmatmul.mubr.bf16.gmra.mxu1 %v2363_v23 }
  0x95   : > { %1125 = vmatprep.mubr.bf16.mxu1 %v2367_v24 }
  0x9c   : > { %1126 = vmatmul.mubr.bf16.gmra.mxu1 %v2369_v27 }
  0x9d   : > { %1133 = vmatprep.mubr.bf16.mxu1 %v2373_v28 }
  0xa4   : > { %1134 = vmatmul.mubr.bf16.gmra.mxu1 %v2375_v31 }
  0xa5   : > { %1141 = vmatprep.mubr.bf16.mxu1 %v2376_v32 }
  0xac   : > { %1142 = vmatmul.mubr.bf16.gmra.mxu1 %v2378_v33 }
  0xad   : > { %1149 = vmatprep.mubr.bf16.mxu1 %v2379_v34 }
  0xb4   : > { %1150 = vmatmul.mubr.bf16.gmra.mxu1 %v2381_v35 }
  0xb5   : > { %1157 = vmatprep.mubr.bf16.mxu1 %v2382_v36 }
  0xbc   : > { %1158 = vmatmul.mubr.bf16.gmra.mxu1 %v2384_v37 }
  0xbd   : > { %1165 = vmatprep.mubr.bf16.mxu1 %v2385_v38 }
  0xc4   : > { %1166 = vmatmul.mubr.bf16.gmra.mxu1 %v2387_v39 }
  0xec   : > { %v2028_v40 = vpop.f32.mrf.mxu1  ;;  %v1956_v45 = vpop.f32.mrf.mxu0 }
  0xee   : > { %v2029_v41 = vpop.f32.mrf.mxu1  ;;  %v1957_v48 = vpop.f32.mrf.mxu0 }
  0xef   : > { %v2629_v42 = vadd.f32 %v2029_v41, %v2028_v40  ;;  %v1958_v13 = vadd.f32 %v1957_v48, %v1956_v45 }
  0xf0   : > { %v2031_v43 = vpop.f32.mrf.mxu1  ;;  %v1959_v50 = vpop.f32.mrf.mxu0 }
  0xf1   : > { %v887_v20 = vadd.f32 %v1958_v13, %v2648_v17 }
  0xf2   : > { %v2032_v44 = vpop.f32.mrf.mxu1  ;;  %v1960_v53 = vpop.f32.mrf.mxu0 }
  0xf3   : > { %v2631_v46 = vadd.f32 %v2032_v44, %v2031_v43  ;;  %v1961_v16 = vadd.f32 %v1960_v53, %v1959_v50 }
  0xf4   : > { %v2034_v47 = vpop.f32.mrf.mxu1  ;;  %v1962_v55 = vpop.f32.mrf.mxu0 }
  0xf5   : > { %v890_v24 = vadd.f32 %v1961_v16, %v2648_v17 }
  0xf6   : > { %v2035_v49 = vpop.f32.mrf.mxu1  ;;  %v1963_v58 = vpop.f32.mrf.mxu0 }
  0xf7   : > { %v2633_v51 = vadd.f32 %v2035_v49, %v2034_v47  ;;  %v1964_v29 = vadd.f32 %v1963_v58, %v1962_v55 }
  0xf8   : > { %v2037_v52 = vpop.f32.mrf.mxu1  ;;  %v1965_v60 = vpop.f32.mrf.mxu0 }
  0xf9   : > { %v895_v38 = vadd.f32 %v1964_v29, %v2648_v17 }
  0xfa   : > { %v2038_v54 = vpop.f32.mrf.mxu1  ;;  %v1966_v63 = vpop.f32.mrf.mxu0 }
  0xfb   : > { %v2635_v56 = vadd.f32 %v2038_v54, %v2037_v52  ;;  %v1967_v33 = vadd.f32 %v1966_v63, %v1965_v60 }
  0xfc   : > { %v2040_v57 = vpop.f32.mrf.mxu1  ;;  %v1968_v1 = vpop.f32.mrf.mxu0 }
  0xfd   : > { %v898_v43 = vadd.f32 %v1967_v33, %v2648_v17 }
  0xfe   : > { %v2041_v59 = vpop.f32.mrf.mxu1  ;;  %v1969_v4 = vpop.f32.mrf.mxu0 }
  0xff   : > { %v2637_v61 = vadd.f32 %v2041_v59, %v2040_v57  ;;  %v1970_v50 = vadd.f32 %v1969_v4, %v1968_v1 }
 0x100   : > { %v2043_v62 = vpop.f32.mrf.mxu1  ;;  %v1971_v6 = vpop.f32.mrf.mxu0 }
 0x102   : > { %v2044_v0 = vpop.f32.mrf.mxu1  ;;  %v1972_v9 = vpop.f32.mrf.mxu0 }
 0x103   : > { %v2639_v2 = vadd.f32 %v2044_v0, %v2043_v62  ;;  %v1973_v55 = vadd.f32 %v1972_v9, %v1971_v6  ;;  %v903_v62 = vadd.f32 %v1970_v50, %v2648_v17 }
 0x104   : > { %v2046_v3 = vpop.f32.mrf.mxu1  ;;  %v1974_v11 = vpop.f32.mrf.mxu0 }
 0x106   : > { %v2047_v5 = vpop.f32.mrf.mxu1  ;;  %v1975_v15 = vpop.f32.mrf.mxu0 }
 0x107   : > { %v2641_v7 = vadd.f32 %v2047_v5, %v2046_v3 }
 0x108   : > { %v2049_v8 = vpop.f32.mrf.mxu1  ;;  %v1977_v19 = vpop.f32.mrf.mxu0 }
 0x10a   : > { %v2050_v10 = vpop.f32.mrf.mxu1  ;;  %v1978_v23 = vpop.f32.mrf.mxu0 }
 0x10b   : > { %v2643_v12 = vadd.f32 %v2050_v10, %v2049_v8  ;;  %v906_v8 = vadd.f32 %v1973_v55, %v2648_v17 }
 0x10c   : > { %v2068_v14 = vpop.f32.mrf.mxu1  ;;  %v2652_v26 = vpop.f32.mrf.mxu0 }
 0x10e   : > { %v2069_v18 = vpop.f32.mrf.mxu1  ;;  %v1981_v31 = vpop.f32.mrf.mxu0 }
 0x10f   : > { %v2070_v21 = vadd.f32 %v2069_v18, %v2068_v14  ;;  %v1976_v14 = vadd.f32 %v1975_v15, %v1974_v11  ;;  %v1979_v18 = vadd.f32 %v1978_v23, %v1977_v19  ;;  %v1982_v19 = vadd.f32 %v1981_v31, %v2652_v26 }
 0x110   : > { %v2071_v22 = vpop.f32.mrf.mxu1  ;;  %v1983_v35 = vpop.f32.mrf.mxu0 }
 0x111   : > { %v1048_v27 = vadd.f32 %v2070_v21, %v887_v20 }
 0x112   : > { %v2072_v25 = vpop.f32.mrf.mxu1  ;;  %v1984_v41 = vpop.f32.mrf.mxu0 }
 0x113   : > { %v2073_v28 = vadd.f32 %v2072_v25, %v2071_v22  ;;  %v1174_v36 = vmax.f32 %v1048_v27, 0.0  ;;  %v911_v25 = vadd.f32 %v1976_v14, %v2648_v17 }
 0x114   : > { %v2074_v30 = vpop.f32.mrf.mxu1  ;;  %v2656_v47 = vpop.f32.mrf.mxu0 }
 0x115   : > { %v1051_v32 = vadd.f32 %v2073_v28, %v890_v24 }
 0x116   : > { %v2075_v34 = vpop.f32.mrf.mxu1  ;;  %v1987_v53 = vpop.f32.mrf.mxu0 }
 0x117   : > { %v1175_v37 = vmax.f32 %v1051_v32, 0.0  ;;  %v2076_v39 = vadd.f32 %v2075_v34, %v2074_v30  ;;  %v914_v30 = vadd.f32 %v1979_v18, %v2648_v17  ;;  %v1988_v31 = vadd.f32 %v1987_v53, %v2656_v47 }
 0x118   : > { %v2077_v40 = vpop.f32.mrf.mxu1  ;;  %v1989_v58 = vpop.f32.mrf.mxu0 }
 0x119   : > { %v1206_v44 = vpack.c.bf16 %v1175_v37, %v1174_v36  ;;  %v1056_v48 = vadd.f32 %v2076_v39, %v895_v38  ;;  %v1985_v38 = vadd.f32 %v1984_v41, %v1983_v35 }
 0x11a   : > { %v2078_v45 = vpop.f32.mrf.mxu1  ;;  %v1990_v3 = vpop.f32.mrf.mxu0 }
 0x11b   : > { %v2079_v49 = vadd.f32 %v2078_v45, %v2077_v40  ;;  %2204 = vmatprep.mubr.bf16.mxu0 %v1206_v44  ;;  %v1176_v59 = vmax.f32 %v1056_v48, 0.0  ;;  %v919_v45 = vadd.f32 %v1982_v19, %v2648_v17 }
 0x11c   : > { %v2080_v52 = vpop.f32.mrf.mxu1  ;;  %v2660_v13 = vpop.f32.mrf.mxu0 }
 0x11d   : > { %v1059_v54 = vadd.f32 %v2079_v49, %v898_v43 }
 0x11e   : > { %v2081_v57 = vpop.f32.mrf.mxu1  ;;  %v1993_v9 = vpop.f32.mrf.mxu0 }
 0x11f   : > { %v1177_v60 = vmax.f32 %v1059_v54, 0.0  ;;  %v2082_v63 = vadd.f32 %v2081_v57, %v2080_v52  ;;  %v922_v52 = vadd.f32 %v1985_v38, %v2648_v17  ;;  %v1994_v53 = vadd.f32 %v1993_v9, %v2660_v13 }
 0x120   : > { %v2083_v0 = vpop.f32.mrf.mxu1  ;;  %v1995_v21 = vpop.f32.mrf.mxu0 }
 0x121   : > { %v1207_v5 = vpack.c.bf16 %v1177_v60, %v1176_v59  ;;  %v1064_v1 = vadd.f32 %v2082_v63, %v903_v62  ;;  %v1991_v62 = vadd.f32 %v1990_v3, %v1989_v58 }
 0x122   : > { %v2084_v10 = vpop.f32.mrf.mxu1  ;;  %v1996_v29 = vpop.f32.mrf.mxu0 }
 0x123   : > { %v2085_v4 = vadd.f32 %v2084_v10, %v2083_v0  ;;  %2205 = vmatmul.mubr.bf16.vlgmr.msra.gmra.mxu0 %v1207_v5  ;;  %v1178_v22 = vmax.f32 %v1064_v1, 0.0  ;;  %v927_v10 = vadd.f32 %v1988_v31, %v2648_v17 }
 0x124   : > { %v2086_v6 = vpop.f32.mrf.mxu1  ;;  %v2664_v34 = vpop.f32.mrf.mxu0 }
 0x125   : > { %v1067_v16 = vadd.f32 %v2085_v4, %v906_v8 }
 0x126   : > { %v2087_v20 = vpop.f32.mrf.mxu1  ;;  %v1999_v36 = vpop.f32.mrf.mxu0 }
 0x127   : > { %v1179_v24 = vmax.f32 %v1067_v16, 0.0  ;;  %v2088_v27 = vadd.f32 %v2087_v20, %v2086_v6  ;;  %v930_v6 = vadd.f32 %v1991_v62, %v2648_v17  ;;  %v2000_v13 = vadd.f32 %v1999_v36, %v2664_v34 }
 0x128   : > { %v2089_v28 = vpop.f32.mrf.mxu1  ;;  %v2001_v40 = vpop.f32.mrf.mxu0 }
 0x129   : > { %v1208_v32 = vpack.c.bf16 %v1179_v24, %v1178_v22  ;;  %v1072_v11 = vadd.f32 %v2088_v27, %v911_v25  ;;  %v1997_v25 = vadd.f32 %v1996_v29, %v1995_v21 }
 0x12a   : > { %v2090_v33 = vpop.f32.mrf.mxu1  ;;  %v2002_v50 = vpop.f32.mrf.mxu0 }
 0x12b   : > { %v2091_v15 = vadd.f32 %v2090_v33, %v2089_v28  ;;  %2208 = vmatprep.mubr.bf16.mxu0 %v1208_v32  ;;  %v1180_v43 = vmax.f32 %v1072_v11, 0.0  ;;  %v935_v33 = vadd.f32 %v1994_v53, %v2648_v17  ;;  %v938_v19 = vadd.f32 %v1997_v25, %v2648_v17 }
 0x12c   : > { %v2092_v23 = vpop.f32.mrf.mxu1  ;;  %v2004_v57 = vpop.f32.mrf.mxu0  ;;  %v2003_v29 = vadd.f32 %v2002_v50, %v2001_v40 }
 0x12d   : > { %v1075_v37 = vadd.f32 %v2091_v15, %v914_v30 }
 0x12e   : > { %v2093_v39 = vpop.f32.mrf.mxu1  ;;  %v2005_v41 = vpop.f32.mrf.mxu0 }
 0x12f   : > { %v1181_v44 = vmax.f32 %v1075_v37, 0.0  ;;  %v2094_v48 = vadd.f32 %v2093_v39, %v2092_v23  ;;  %v2006_v34 = vadd.f32 %v2005_v41, %v2004_v57 }
 0x130   : > { %v2095_v49 = vpop.f32.mrf.mxu1  ;;  %v2007_v0 = vpop.f32.mrf.mxu0 }
 0x131   : > { %v1209_v54 = vpack.c.bf16 %v1181_v44, %v1180_v43  ;;  %v1080_v59 = vadd.f32 %v2094_v48, %v919_v45 }
 0x132   : > { %v2096_v55 = vpop.f32.mrf.mxu1  ;;  %v2008_v14 = vpop.f32.mrf.mxu0 }
 0x133   : > { %v2097_v26 = vadd.f32 %v2096_v55, %v2095_v49  ;;  %2209 = vmatmul.mubr.bf16.gmra.mxu0 %v1209_v54  ;;  %v1182_v5 = vmax.f32 %v1080_v59, 0.0  ;;  %v946_v59 = vadd.f32 %v2003_v29, %v2648_v17  ;;  %v2009_v40 = vadd.f32 %v2008_v14, %v2007_v0 }
 0x134   : > { %v2098_v35 = vpop.f32.mrf.mxu1  ;;  %v2010_v20 = vpop.f32.mrf.mxu0 }
 0x135   : > { %v1083_v60 = vadd.f32 %v2097_v26, %v922_v52  ;;  %v943_v52 = vadd.f32 %v2000_v13, %v2648_v17 }
 0x136   : > { %v2099_v63 = vpop.f32.mrf.mxu1  ;;  %v2011_v3 = vpop.f32.mrf.mxu0 }
 0x137   : > { %v1183_v8 = vmax.f32 %v1083_v60, 0.0  ;;  %v2100_v1 = vadd.f32 %v2099_v63, %v2098_v35  ;;  %v2012_v57 = vadd.f32 %v2011_v3, %v2010_v20 }
 0x138   : > { %v2101_v4 = vpop.f32.mrf.mxu1  ;;  %v2013_v28 = vpop.f32.mrf.mxu0 }
 0x139   : > { %v1210_v16 = vpack.c.bf16 %v1183_v8, %v1182_v5  ;;  %v1088_v22 = vadd.f32 %v2100_v1, %v927_v10  ;;  %v951_v1 = vadd.f32 %v2006_v34, %v2648_v17 }
 0x13a   : > { %v2102_v18 = vpop.f32.mrf.mxu1  ;;  %v2014_v38 = vpop.f32.mrf.mxu0 }
 0x13b   : > { %v2103_v47 = vadd.f32 %v2102_v18, %v2101_v4  ;;  %2212 = vmatprep.mubr.bf16.mxu0 %v1210_v16  ;;  %v1184_v30 = vmax.f32 %v1088_v22, 0.0  ;;  %v954_v16 = vadd.f32 %v2009_v40, %v2648_v17  ;;  %v2015_v0 = vadd.f32 %v2014_v38, %v2013_v28 }
 0x13c   : > { %v2104_v58 = vpop.f32.mrf.mxu1  ;;  %v2016_v45 = vpop.f32.mrf.mxu0 }
 0x13d   : > { %v1091_v24 = vadd.f32 %v2103_v47, %v930_v6 }
 0x13e   : > { %v2105_v27 = vpop.f32.mrf.mxu1  ;;  %v2017_v35 = vpop.f32.mrf.mxu0 }
 0x13f   : > { %v1185_v32 = vmax.f32 %v1091_v24, 0.0  ;;  %v2106_v11 = vadd.f32 %v2105_v27, %v2104_v58  ;;  %v2018_v20 = vadd.f32 %v2017_v35, %v2016_v45 }
 0x140   : > { %v2107_v15 = vpop.f32.mrf.mxu1  ;;  %v2019_v5 = vpop.f32.mrf.mxu0 }
 0x141   : > { %v1211_v23 = vpack.c.bf16 %v1185_v32, %v1184_v30  ;;  %v1096_v39 = vadd.f32 %v2106_v11, %v935_v33  ;;  %v959_v32 = vadd.f32 %v2012_v57, %v2648_v17 }
 0x142   : > { %v2108_v37 = vpop.f32.mrf.mxu1  ;;  %v2020_v47 = vpop.f32.mrf.mxu0 }
 0x143   : > { %v2109_v43 = vadd.f32 %v2108_v37, %v2107_v15  ;;  %2213 = vmatmul.mubr.bf16.gmra.mxu0 %v1211_v23  ;;  %v1186_v48 = vmax.f32 %v1096_v39, 0.0  ;;  %v962_v15 = vadd.f32 %v2015_v0, %v2648_v17  ;;  %v2021_v28 = vadd.f32 %v2020_v47, %v2019_v5 }
 0x144   : > { %v2110_v9 = vpop.f32.mrf.mxu1  ;;  %v2022_v25 = vpop.f32.mrf.mxu0 }
 0x145   : > { %v1099_v21 = vadd.f32 %v2109_v43, %v938_v19 }
 0x146   : > { %v2111_v44 = vpop.f32.mrf.mxu1  ;;  %v2023_v37 = vpop.f32.mrf.mxu0 }
 0x147   : > { %v1187_v49 = vmax.f32 %v1099_v21, 0.0  ;;  %v2112_v54 = vadd.f32 %v2111_v44, %v2110_v9  ;;  %v967_v44 = vadd.f32 %v2018_v20, %v2648_v17  ;;  %v2024_v45 = vadd.f32 %v2023_v37, %v2022_v25 }
 0x148   : > { %v2113_v55 = vpop.f32.mrf.mxu1  ;;  %v2025_v9 = vpop.f32.mrf.mxu0  ;;  %v991_v37 = vadd.f32 %v2633_v51, %v2648_v17 }
 0x149   : > { %v1212_v26 = vpack.c.bf16 %v1187_v49, %v1186_v48  ;;  %v1104_v60 = vadd.f32 %v2112_v54, %v943_v52  ;;  %v970_v52 = vadd.f32 %v2021_v28, %v2648_v17  ;;  %v975_v40 = vadd.f32 %v2024_v45, %v2648_v17 }
 0x14a   : > { %v2114_v31 = vpop.f32.mrf.mxu1 }
 0x14b   : > { %v2115_v62 = vadd.f32 %v2114_v31, %v2113_v55  ;;  %2216 = vmatprep.mubr.bf16.mxu0 %v1212_v26  ;;  %v1188_v8 = vmax.f32 %v1104_v60, 0.0 }
 0x14c   : > { %v2116_v36 = vpop.f32.mrf.mxu1 }
 0x14d   : > { %v1107_v63 = vadd.f32 %v2115_v62, %v946_v59  ;;  %v2026_v59 = vpop.f32.mrf.mxu0 }
 0x14e   : > { %v2117_v50 = vpop.f32.mrf.mxu1  ;;  %v2027_v62 = vadd.f32 %v2026_v59, %v2025_v9 }
 0x14f   : > { %v1189_v10 = vmax.f32 %v1107_v63, 0.0  ;;  %v2118_v4 = vadd.f32 %v2117_v50, %v2116_v36 }
 0x150   : > { %v2119_v6 = vpop.f32.mrf.mxu1 }
 0x151   : > { %v1213_v18 = vpack.c.bf16 %v1189_v10, %v1188_v8  ;;  %v1112_v53 = vadd.f32 %v2118_v4, %v951_v1  ;;  %v978_v8 = vadd.f32 %v2027_v62, %v2648_v17 }
 0x152   : > { %v2120_v22 = vpop.f32.mrf.mxu1 }
 0x153   : > { %v2121_v58 = vadd.f32 %v2120_v22, %v2119_v6  ;;  %2217 = vmatmul.mubr.bf16.gmra.mxu0 %v1213_v18  ;;  %v1190_v27 = vmax.f32 %v1112_v53, 0.0 }
 0x154   : > { %v2122_v41 = vpop.f32.mrf.mxu1 }
 0x155   : > { %v1115_v24 = vadd.f32 %v2121_v58, %v954_v16 }
 0x156   : > { %v2123_v14 = vpop.f32.mrf.mxu1 }
 0x157   : > { %v1191_v30 = vmax.f32 %v1115_v24, 0.0  ;;  %v2124_v33 = vadd.f32 %v2123_v14, %v2122_v41  ;;  %v983_v41 = vadd.f32 %v2629_v42, %v2648_v17  ;;  %v986_v14 = vadd.f32 %v2631_v46, %v2648_v17 }
 0x158   : > { %v2125_v11 = vpop.f32.mrf.mxu1 }
 0x159   : > { %v1214_v19 = vpack.c.bf16 %v1191_v30, %v1190_v27  ;;  %v1120_v39 = vadd.f32 %v2124_v33, %v959_v32 }
 0x15a   : > { %v2126_v23 = vpop.f32.mrf.mxu1 }
 0x15b   : > { %v2127_v43 = vadd.f32 %v2126_v23, %v2125_v11  ;;  %2220 = vmatprep.mubr.bf16.mxu0 %v1214_v19  ;;  %v1192_v21 = vmax.f32 %v1120_v39, 0.0 }
 0x15c   : > { %v2128_v3 = vpop.f32.mrf.mxu1 }
 0x15d   : > { %v1123_v13 = vadd.f32 %v2127_v43, %v962_v15  ;;  %v994_v43 = vadd.f32 %v2635_v56, %v2648_v17 }
 0x15e   : > { %v2129_v38 = vpop.f32.mrf.mxu1 }
 0x15f   : > { %v1193_v29 = vmax.f32 %v1123_v13, 0.0  ;;  %v2130_v48 = vadd.f32 %v2129_v38, %v2128_v3 }
 0x160   : > { %v2131_v49 = vpop.f32.mrf.mxu1 }
 0x161   : > { %v1215_v54 = vpack.c.bf16 %v1193_v29, %v1192_v21  ;;  %v1128_v26 = vadd.f32 %v2130_v48, %v967_v44  ;;  %v999_v44 = vadd.f32 %v2637_v61, %v2648_v17 }
 0x162   : > { %v2132_v55 = vpop.f32.mrf.mxu1 }
 0x163   : > { %v2133_v31 = vadd.f32 %v2132_v55, %v2131_v49  ;;  %2221 = vmatmul.mubr.bf16.gmra.mxu0 %v1215_v54  ;;  %v1194_v36 = vmax.f32 %v1128_v26, 0.0  ;;  %v1002_v49 = vadd.f32 %v2639_v2, %v2648_v17 }
 0x164   : > { %v2134_v35 = vpop.f32.mrf.mxu1 }
 0x165   : > { %v1131_v60 = vadd.f32 %v2133_v31, %v970_v52 }
 0x166   : > { %v2135_v34 = vpop.f32.mrf.mxu1 }
 0x167   : > { %v1195_v63 = vmax.f32 %v1131_v60, 0.0  ;;  %v2136_v50 = vadd.f32 %v2135_v34, %v2134_v35  ;;  %v1007_v60 = vadd.f32 %v2641_v7, %v2648_v17  ;;  %v1010_v34 = vadd.f32 %v2643_v12, %v2648_v17 }
 0x168   : > { %v2137_v5 = vpop.f32.mrf.mxu1 }
 0x169   : > { %v1216_v10 = vpack.c.bf16 %v1195_v63, %v1194_v36  ;;  %v1136_v4 = vadd.f32 %v2136_v50, %v975_v40 }
 0x16a   : > { %v2138_v1 = vpop.f32.mrf.mxu1 }
 0x16b   : > { %v2139_v6 = vadd.f32 %v2138_v1, %v2137_v5  ;;  %2224 = vmatprep.mubr.bf16.mxu0 %v1216_v10  ;;  %v1196_v47 = vmax.f32 %v1136_v4, 0.0 }
 0x16c   : > { %v2140_v16 = vpop.f32.mrf.mxu1 }
 0x16d   : > { %v1139_v18 = vadd.f32 %v2139_v6, %v978_v8 }
 0x16e   : > { %v2141_v22 = vpop.f32.mrf.mxu1 }
 0x16f   : > { %v1197_v53 = vmax.f32 %v1139_v18, 0.0  ;;  %v2142_v58 = vadd.f32 %v2141_v22, %v2140_v16 }
 0x170   : > { %v2143_v57 = vpop.f32.mrf.mxu1 }
 0x171   : > { %v1217_v24 = vpack.c.bf16 %v1197_v53, %v1196_v47  ;;  %v1144_v25 = vadd.f32 %v2142_v58, %v983_v41 }
 0x172   : > { %v2144_v0 = vpop.f32.mrf.mxu1 }
 0x173   : > { %v2145_v27 = vadd.f32 %v2144_v0, %v2143_v57  ;;  %2225 = vmatmul.mubr.bf16.gmra.mxu0 %v1217_v24  ;;  %v1198_v11 = vmax.f32 %v1144_v25, 0.0 }
 0x174   : > { %v2146_v30 = vpop.f32.mrf.mxu1 }
 0x175   : > { %v1147_v32 = vadd.f32 %v2145_v27, %v986_v14 }
 0x176   : > { %v2147_v33 = vpop.f32.mrf.mxu1 }
 0x177   : > { %v1199_v15 = vmax.f32 %v1147_v32, 0.0  ;;  %v2148_v19 = vadd.f32 %v2147_v33, %v2146_v30 }
 0x178   : > { %v2149_v23 = vpop.f32.mrf.mxu1 }
 0x179   : > { %v1218_v39 = vpack.c.bf16 %v1199_v15, %v1198_v11  ;;  %v1152_v20 = vadd.f32 %v2148_v19, %v991_v37 }
 0x17a   : > { %v2150_v42 = vpop.f32.mrf.mxu1 }
 0x17b   : > { %v2151_v46 = vadd.f32 %v2150_v42, %v2149_v23  ;;  %2228 = vmatprep.mubr.bf16.mxu0 %v1218_v39  ;;  %v1200_v38 = vmax.f32 %v1152_v20, 0.0 }
 0x17c   : > { %v2152_v3 = vpop.f32.mrf.mxu1 }
 0x17d   : > { %v1155_v13 = vadd.f32 %v2151_v46, %v994_v43 }
 0x17e   : > { %v2153_v28 = vpop.f32.mrf.mxu1 }
 0x17f   : > { %v1201_v9 = vmax.f32 %v1155_v13, 0.0  ;;  %v2154_v21 = vadd.f32 %v2153_v28, %v2152_v3 }
 0x180   : > { %v2155_v29 = vpop.f32.mrf.mxu1 }
 0x181   : > { %v1219_v48 = vpack.c.bf16 %v1201_v9, %v1200_v38  ;;  %v1160_v52 = vadd.f32 %v2154_v21, %v999_v44 }
 0x182   : > { %v2156_v51 = vpop.f32.mrf.mxu1 }
 0x183   : > { %v2157_v56 = vadd.f32 %v2156_v51, %v2155_v29  ;;  %2229 = vmatmul.mubr.bf16.gmra.mxu0 %v1219_v48  ;;  %v1202_v26 = vmax.f32 %v1160_v52, 0.0 }
 0x184   : > { %v2158_v54 = vpop.f32.mrf.mxu1 }
 0x185   : > { %v1163_v55 = vadd.f32 %v2157_v56, %v1002_v49 }
 0x186   : > { %v2159_v59 = vpop.f32.mrf.mxu1 }
 0x187   : > { %v1203_v31 = vmax.f32 %v1163_v55, 0.0  ;;  %v2160_v45 = vadd.f32 %v2159_v59, %v2158_v54 }
 0x188   : > { %v2161_v35 = vpop.f32.mrf.mxu1 }
 0x189   : > { %v1220_v61 = vpack.c.bf16 %v1203_v31, %v1202_v26  ;;  %v1168_v2 = vadd.f32 %v2160_v45, %v1007_v60 }
 0x18a   : > { %v2162_v62 = vpop.f32.mrf.mxu1 }
 0x18b   : > { %v2163_v36 = vadd.f32 %v2162_v62, %v2161_v35  ;;  %2232 = vmatprep.mubr.bf16.mxu0 %v1220_v61  ;;  %v1204_v40 = vmax.f32 %v1168_v2, 0.0 }
 0x18d   : > { %v1171_v63 = vadd.f32 %v2163_v36, %v1010_v34 }
 0x18f   : > { %v1205_v50 = vmax.f32 %v1171_v63, 0.0 }
 0x191   : > { %v1221_v5 = vpack.c.bf16 %v1205_v50, %v1204_v40 }
 0x193   : > { %2233 = vmatmul.mubr.bf16.gmra.mxu0 %v1221_v5 }
 0x1e3   : > { %v2206_v8 = vpop.f32.mrf.mxu0 }
 0x1e5   : > { %v1320_v10 = vpop.f32.mrf.mxu0 }
 0x1e7   : > { %v2207_v7 = vpop.f32.mrf.mxu0 }
 0x1e8   : > { %v1853_v12 = vpack.c.bf16 %v2207_v7, %v2206_v8 }
 0x1e9   : > { %v1323_v17 = vpop.f32.mrf.mxu0 }
 0x1ea   : > { %1925 = vst [vmem:[%s2706_s10 + $0x8] sm:$0xff] %v1853_v12   ;;  %v1848_v1 = vpack.c.bf16 %v1323_v17, %v1320_v10 }
 0x1ec   : > { %1849 = vst [vmem:[%s2706_s10] sm:$0xff] %v1848_v1  }
 0x1f3   : > { %v2210_v4 = vpop.f32.mrf.mxu0 }
 0x1f5   : > { %v1336_v6 = vpop.f32.mrf.mxu0 }
 0x1f7   : > { %v2211_v16 = vpop.f32.mrf.mxu0 }
 0x1f8   : > { %v1863_v18 = vpack.c.bf16 %v2211_v16, %v2210_v4 }
 0x1f9   : > { %v1339_v22 = vpop.f32.mrf.mxu0 }
 0x1fa   : > { %1927 = vst [vmem:[%s2706_s10 + $0x18] sm:$0xff] %v1863_v18   ;;  %v1858_v47 = vpack.c.bf16 %v1339_v22, %v1336_v6 }
 0x1fc   : > { %1926 = vst [vmem:[%s2706_s10 + $0x10] sm:$0xff] %v1858_v47  }
 0x203   : > { %v2214_v53 = vpop.f32.mrf.mxu0 }
 0x205   : > { %v1352_v58 = vpop.f32.mrf.mxu0 }
 0x207   : > { %v2215_v57 = vpop.f32.mrf.mxu0 }
 0x208   : > { %v1873_v41 = vpack.c.bf16 %v2215_v57, %v2214_v53 }
 0x209   : > { %v1355_v24 = vpop.f32.mrf.mxu0 }
 0x20a   : > { %1929 = vst [vmem:[%s2706_s10 + $0x28] sm:$0xff] %v1873_v41   ;;  %v1868_v0 = vpack.c.bf16 %v1355_v24, %v1352_v58 }
 0x20c   : > { %1928 = vst [vmem:[%s2706_s10 + $0x20] sm:$0xff] %v1868_v0  }
 0x213   : > { %v2218_v14 = vpop.f32.mrf.mxu0 }
 0x215   : > { %v1368_v25 = vpop.f32.mrf.mxu0 }
 0x217   : > { %v2219_v27 = vpop.f32.mrf.mxu0 }
 0x218   : > { %v1883_v30 = vpack.c.bf16 %v2219_v27, %v2218_v14 }
 0x219   : > { %v1371_v32 = vpop.f32.mrf.mxu0 }
 0x21a   : > { %1931 = vst [vmem:[%s2706_s10 + $0x38] sm:$0xff] %v1883_v30   ;;  %v1878_v33 = vpack.c.bf16 %v1371_v32, %v1368_v25 }
 0x21c   : > { %1930 = vst [vmem:[%s2706_s10 + $0x30] sm:$0xff] %v1878_v33  }
 0x223   : > { %v2222_v11 = vpop.f32.mrf.mxu0 }
 0x225   : > { %v1384_v15 = vpop.f32.mrf.mxu0 }
 0x227   : > { %v2223_v19 = vpop.f32.mrf.mxu0 }
 0x228   : > { %v1893_v23 = vpack.c.bf16 %v2223_v19, %v2222_v11 }
 0x229   : > { %v1387_v37 = vpop.f32.mrf.mxu0 }
 0x22a   : > { %1933 = vst [vmem:[%s2706_s10 + $0x48] sm:$0xff] %v1893_v23   ;;  %v1888_v39 = vpack.c.bf16 %v1387_v37, %v1384_v15 }
 0x22c   : > { %1932 = vst [vmem:[%s2706_s10 + $0x40] sm:$0xff] %v1888_v39  }
 0x233   : > { %v2226_v42 = vpop.f32.mrf.mxu0 }
 0x235   : > { %v1400_v43 = vpop.f32.mrf.mxu0 }
 0x237   : > { %v2227_v20 = vpop.f32.mrf.mxu0 }
 0x238   : > { %v1903_v46 = vpack.c.bf16 %v2227_v20, %v2226_v42 }
 0x239   : > { %v1403_v3 = vpop.f32.mrf.mxu0 }
 0x23a   : > { %1935 = vst [vmem:[%s2706_s10 + $0x58] sm:$0xff] %v1903_v46   ;;  %v1898_v13 = vpack.c.bf16 %v1403_v3, %v1400_v43 }
 0x23c   : > { %1934 = vst [vmem:[%s2706_s10 + $0x50] sm:$0xff] %v1898_v13  }
 0x243   : > { %v2230_v28 = vpop.f32.mrf.mxu0 }
 0x245   : > { %v1416_v38 = vpop.f32.mrf.mxu0 }
 0x247   : > { %v2231_v9 = vpop.f32.mrf.mxu0 }
 0x248   : > { %v1913_v21 = vpack.c.bf16 %v2231_v9, %v2230_v28 }
 0x249   : > { %v1419_v29 = vpop.f32.mrf.mxu0 }
 0x24a   : > { %1937 = vst [vmem:[%s2706_s10 + $0x68] sm:$0xff] %v1913_v21   ;;  %v1908_v44 = vpack.c.bf16 %v1419_v29, %v1416_v38 }
 0x24c   : > { %1936 = vst [vmem:[%s2706_s10 + $0x60] sm:$0xff] %v1908_v44  }
 0x253   : > { %v2234_v48 = vpop.f32.mrf.mxu0 }
 0x255   : > { %v1432_v51 = vpop.f32.mrf.mxu0 }
 0x257   : > { %v2235_v49 = vpop.f32.mrf.mxu0 }
 0x258   : > { %v1923_v52 = vpack.c.bf16 %v2235_v49, %v2234_v48 }
 0x259   : > { %v1435_v56 = vpop.f32.mrf.mxu0 }
 0x25a   : > { %1939 = vst [vmem:[%s2706_s10 + $0x78] sm:$0xff] %v1923_v52   ;;  %v1918_v54 = vpack.c.bf16 %v1435_v56, %v1432_v51 }
 0x25c   : > { %1938 = vst [vmem:[%s2706_s10 + $0x70] sm:$0xff] %v1918_v54  }
 0x25d PF: > { %s14_s15 = sadd.s32 1, %s2402_s15  }
 0x25e   : > { %p11_p4 = scmp.ge.s32.totalorder %s14_s15, 4  }
 0x260   :  { %13 = sbr.rel (!%p11_p4) target bundleno = 1 (0x1), region = 66 }

</bundles_post_ra>
